<compile_context>
chip_gen: v6e
topology: v6e:2x2x1
jax: 0.10.0
libtpu: 0.0.40
codegen_flags: <defaults>
</compile_context>

<pallas_src>
from functools import partial

import jax
import jax.numpy as jnp
from jax.experimental import pallas as pl
from jax.experimental.pallas import tpu as pltpu


def _lipswish(x, beta=1.0):
    # LipSwish(x) = x * sigmoid(beta*x) / 1.1, with the sigmoid in tanh form:
    # sigmoid(t) = 0.5 + 0.5*tanh(t/2)  ->  a single EUP op per activation.
    return x * (0.5 + 0.5 * jnp.tanh((0.5 * beta) * x)) * (1.0 / 1.1)


def _make_kernel(rc, mxu_dtype):
    """Kernel over a natural-layout (tb, C) row block, chunked by rc rows."""
    contract = (((1,), (1,)), ((), ()))  # act(rows, K) x W(N, K) -> (rows, N)

    def kernel(x_ref, w1_ref, b1_ref, w2_ref, b2_ref, w3_ref, b3_ref,
               z_ref, ld_ref):
        tb = x_ref.shape[0]
        n_chunks = tb // rc

        def lin(a, w_ref, b_ref):
            # Bias is a (1, N) row; the sublane-broadcast in the add is free.
            return jax.lax.dot_general(
                a.astype(mxu_dtype), w_ref[...], contract,
                preferred_element_type=jnp.float32) + b_ref[...]

        def chunk(c, carry):
            off = pl.multiple_of(c * rc, rc)
            a = _lipswish(x_ref[pl.ds(off, rc), :])      # (rc, C)
            a = _lipswish(lin(a, w1_ref, b1_ref))        # (rc, H)
            a = _lipswish(lin(a, w2_ref, b2_ref))        # (rc, C)
            f = lin(a, w3_ref, b3_ref)                   # (rc, H == C), f32
            # Re-read x for the residual add (vld slots are idle; keeps the
            # x vregs from being pinned across the matmuls / activations).
            z_ref[pl.ds(off, rc), :] = x_ref[pl.ds(off, rc), :] + f
            # Per-row log-det: reduce over the feature (lane) axis.
            ld_ref[pl.ds(off, rc), :] = jnp.sum(
                jnp.log(jnp.abs(1.0 + f)), axis=1, keepdims=True)
            return carry

        jax.lax.fori_loop(0, n_chunks, chunk, None, unroll=True)

    return kernel


@partial(jax.jit, static_argnames=("tb", "rc", "use_bf16", "vmem_limit_bytes"))
def residual_block(x, w1, b1, w2, b2, w3, b3, *, tb=256, rc=128,
                   use_bf16=True, vmem_limit_bytes=16 * 1024 * 1024):
    """x: (B, C) float32.  w_i are torch-Linear style (out_features, in_features)."""
    B, C = x.shape
    H = w1.shape[0]
    assert w1.shape == (H, C) and w2.shape == (C, H) and w3.shape == (H, C)
    assert H == C, "literal module requires hidden_channels == in_channels for residual"
    assert tb % rc == 0 and rc % 8 == 0, "row tile / chunk must be multiples of 8"

    # Pad batch up to a multiple of the row tile (padded rows are sliced off).
    Bp = pl.cdiv(B, tb) * tb
    xp = x.astype(jnp.float32)
    if Bp != B:
        xp = jnp.pad(xp, ((0, Bp - B), (0, 0)))

    mxu_dtype = jnp.bfloat16 if use_bf16 else jnp.float32
    w1c, w2c, w3c = (w.astype(mxu_dtype) for w in (w1, w2, w3))
    b1c, b2c, b3c = (b.astype(jnp.float32).reshape(1, -1) for b in (b1, b2, b3))

    grid = (Bp // tb,)
    const = lambda i: (0, 0)
    row_tile = lambda i: (i, 0)

    z, ld = pl.pallas_call(
        _make_kernel(rc, mxu_dtype),
        out_shape=(
            jax.ShapeDtypeStruct((Bp, C), jnp.float32),   # z
            jax.ShapeDtypeStruct((Bp, 1), jnp.float32),   # per-row log_det
        ),
        grid_spec=pltpu.PrefetchScalarGridSpec(
            num_scalar_prefetch=0,
            grid=grid,
            in_specs=[
                pl.BlockSpec((tb, C), row_tile),          # x row block
                pl.BlockSpec((H, C), const),              # W1
                pl.BlockSpec((1, H), const),              # b1 (row)
                pl.BlockSpec((C, H), const),              # W2
                pl.BlockSpec((1, C), const),              # b2
                pl.BlockSpec((H, C), const),              # W3
                pl.BlockSpec((1, H), const),              # b3
            ],
            out_specs=[
                pl.BlockSpec((tb, C), row_tile),          # z row block
                pl.BlockSpec((tb, 1), row_tile),          # log_det column
            ],
        ),
        compiler_params=pltpu.CompilerParams(
            dimension_semantics=("parallel",),
            vmem_limit_bytes=vmem_limit_bytes,
        ),
    )(xp, w1c, b1c, w2c, b2c, w3c, b3c)

    return z[:B], ld[:B, 0]


def _reference(x, w1, b1, w2, b2, w3, b3, *, use_bf16):
    """Pure-JAX reference with the same matmul input precision as the kernel."""
    mxu_dt = jnp.bfloat16 if use_bf16 else jnp.float32

    def lin(h, w, b):
        return jnp.dot(h.astype(mxu_dt), w.astype(mxu_dt).T,
                       preferred_element_type=jnp.float32,
                       precision=jax.lax.Precision.HIGHEST) + b

    h = lin(_lipswish(x), w1, b1)
    h = lin(_lipswish(h), w2, b2)
    f = lin(_lipswish(h), w3, b3)
    return x + f, jnp.sum(jnp.log(jnp.abs(1.0 + f)), axis=1)


if __name__ == "__main__":
    B = 512                # -> 2 grid steps at tb=256 (one per v7x TensorCore)
    in_channels = 32
    hidden_channels = 32   # must equal in_channels (see note above)

    key = jax.random.PRNGKey(0)
    kx, k1, k2, k3, kb1, kb2, kb3 = jax.random.split(key, 7)

    x = jax.random.normal(kx, (B, in_channels), dtype=jnp.float32)

    def lin_init(kw, kb, out_f, in_f):
        bound = 1.0 / (in_f ** 0.5)
        w = jax.random.uniform(kw, (out_f, in_f), jnp.float32, -bound, bound)
        b = jax.random.uniform(kb, (out_f,), jnp.float32, -bound, bound)
        return w, b

    w1, b1 = lin_init(k1, kb1, hidden_channels, in_channels)
    w2, b2 = lin_init(k2, kb2, in_channels, hidden_channels)
    w3, b3 = lin_init(k3, kb3, hidden_channels, in_channels)

    # bf16-weight fast path (recommended on v6e / v7x), matched-precision reference.
    z, log_det = residual_block(x, w1, b1, w2, b2, w3, b3,
                                tb=256, rc=128, use_bf16=True)
    jax.block_until_ready((z, log_det))
    assert z.shape == (B, in_channels) and log_det.shape == (B,)
    z_ref, ld_ref = _reference(x, w1, b1, w2, b2, w3, b3, use_bf16=True)
    assert jnp.allclose(z, z_ref, atol=1e-4, rtol=1e-4)
    assert jnp.allclose(log_det, ld_ref, atol=1e-3, rtol=1e-3)

    # Pure-f32 path: matches the literal PyTorch module numerics.
    z32, ld32 = residual_block(x, w1, b1, w2, b2, w3, b3,
                               tb=256, rc=128, use_bf16=False)
    jax.block_until_ready((z32, ld32))
    z_ref32, ld_ref32 = _reference(x, w1, b1, w2, b2, w3, b3, use_bf16=False)
    assert jnp.allclose(z32, z_ref32, atol=1e-4, rtol=1e-4)
    assert jnp.allclose(ld32, ld_ref32, atol=1e-3, rtol=1e-3)

    print("KERNEL_OK")
</pallas_src>

<mosaic_0001>
module attributes {stable_mosaic.version = 11 : i64} {
  func.func @kernel(%arg0: i32, %arg1: memref<256x32xf32, #tpu.memory_space<vmem>>, %arg2: memref<32x32xbf16, #tpu.memory_space<vmem>>, %arg3: memref<1x32xf32, #tpu.memory_space<vmem>>, %arg4: memref<32x32xbf16, #tpu.memory_space<vmem>>, %arg5: memref<1x32xf32, #tpu.memory_space<vmem>>, %arg6: memref<32x32xbf16, #tpu.memory_space<vmem>>, %arg7: memref<1x32xf32, #tpu.memory_space<vmem>>, %arg8: memref<256x32xf32, #tpu.memory_space<vmem>>, %arg9: memref<256x1xf32, #tpu.memory_space<vmem>>) attributes {dimension_semantics = [#tpu.dimension_semantics<parallel>], iteration_bounds = array<i64: 2>, scalar_prefetch = 0 : i64, scratch_operands = 0 : i64, tpu.core_type = #tpu.core_type<tc>, window_params = [{transform_indices = @transform_0, window_bounds = array<i64: 256, 32>}, {pipeline_mode = #tpu.pipeline_mode<synchronous>, transform_indices = @transform_1, window_bounds = array<i64: 32, 32>}, {pipeline_mode = #tpu.pipeline_mode<synchronous>, transform_indices = @transform_2, window_bounds = array<i64: 1, 32>}, {pipeline_mode = #tpu.pipeline_mode<synchronous>, transform_indices = @transform_3, window_bounds = array<i64: 32, 32>}, {pipeline_mode = #tpu.pipeline_mode<synchronous>, transform_indices = @transform_4, window_bounds = array<i64: 1, 32>}, {pipeline_mode = #tpu.pipeline_mode<synchronous>, transform_indices = @transform_5, window_bounds = array<i64: 32, 32>}, {pipeline_mode = #tpu.pipeline_mode<synchronous>, transform_indices = @transform_6, window_bounds = array<i64: 1, 32>}, {transform_indices = @transform_7, window_bounds = array<i64: 256, 32>}, {transform_indices = @transform_8, window_bounds = array<i64: 256, 1>}]} {
    %c0_i32 = arith.constant 0 : i32
    %c128_i32 = arith.constant 128 : i32
    %0 = arith.muli %c0_i32, %c128_i32 : i32
    %1 = tpu.assume_multiple %0, 128 : i32
    %2 = arith.index_cast %1 : i32 to index
    %c0 = arith.constant 0 : index
    %3 = vector.load %arg1[%2, %c0] : memref<256x32xf32, #tpu.memory_space<vmem>>, vector<128x32xf32>
    %cst = arith.constant 5.000000e-01 : f32
    %4 = vector.broadcast %cst : f32 to vector<128x32xf32>
    %5 = arith.mulf %4, %3 : vector<128x32xf32>
    %6 = math.tanh %5 : vector<128x32xf32>
    %cst_0 = arith.constant 5.000000e-01 : f32
    %7 = vector.broadcast %cst_0 : f32 to vector<128x32xf32>
    %8 = arith.mulf %7, %6 : vector<128x32xf32>
    %cst_1 = arith.constant 5.000000e-01 : f32
    %9 = vector.broadcast %cst_1 : f32 to vector<128x32xf32>
    %10 = arith.addf %9, %8 : vector<128x32xf32>
    %11 = arith.mulf %3, %10 : vector<128x32xf32>
    %cst_2 = arith.constant 0.909090936 : f32
    %12 = vector.broadcast %cst_2 : f32 to vector<128x32xf32>
    %13 = arith.mulf %11, %12 : vector<128x32xf32>
    %14 = arith.truncf %13 : vector<128x32xf32> to vector<128x32xbf16>
    %c0_3 = arith.constant 0 : index
    %c0_4 = arith.constant 0 : index
    %15 = vector.load %arg2[%c0_3, %c0_4] : memref<32x32xbf16, #tpu.memory_space<vmem>>, vector<32x32xbf16>
    %cst_5 = arith.constant dense<0.000000e+00> : vector<128x32xf32>
    %16 = tpu.matmul %14, %15, %cst_5 {dimension_numbers = #tpu.dot_dimension_numbers<[1], [1], [0], [0], [0, 0, 1, 0], [], []>} : vector<128x32xbf16>, vector<32x32xbf16>, vector<128x32xf32> -> vector<128x32xf32>
    %c0_6 = arith.constant 0 : index
    %c0_7 = arith.constant 0 : index
    %17 = vector.load %arg3[%c0_6, %c0_7] : memref<1x32xf32, #tpu.memory_space<vmem>>, vector<1x32xf32>
    %18 = vector.broadcast %17 : vector<1x32xf32> to vector<128x32xf32>
    %19 = arith.addf %16, %18 : vector<128x32xf32>
    %cst_8 = arith.constant 5.000000e-01 : f32
    %20 = vector.broadcast %cst_8 : f32 to vector<128x32xf32>
    %21 = arith.mulf %20, %19 : vector<128x32xf32>
    %22 = math.tanh %21 : vector<128x32xf32>
    %cst_9 = arith.constant 5.000000e-01 : f32
    %23 = vector.broadcast %cst_9 : f32 to vector<128x32xf32>
    %24 = arith.mulf %23, %22 : vector<128x32xf32>
    %cst_10 = arith.constant 5.000000e-01 : f32
    %25 = vector.broadcast %cst_10 : f32 to vector<128x32xf32>
    %26 = arith.addf %25, %24 : vector<128x32xf32>
    %27 = arith.mulf %19, %26 : vector<128x32xf32>
    %cst_11 = arith.constant 0.909090936 : f32
    %28 = vector.broadcast %cst_11 : f32 to vector<128x32xf32>
    %29 = arith.mulf %27, %28 : vector<128x32xf32>
    %30 = arith.truncf %29 : vector<128x32xf32> to vector<128x32xbf16>
    %c0_12 = arith.constant 0 : index
    %c0_13 = arith.constant 0 : index
    %31 = vector.load %arg4[%c0_12, %c0_13] : memref<32x32xbf16, #tpu.memory_space<vmem>>, vector<32x32xbf16>
    %cst_14 = arith.constant dense<0.000000e+00> : vector<128x32xf32>
    %32 = tpu.matmul %30, %31, %cst_14 {dimension_numbers = #tpu.dot_dimension_numbers<[1], [1], [0], [0], [0, 0, 1, 0], [], []>} : vector<128x32xbf16>, vector<32x32xbf16>, vector<128x32xf32> -> vector<128x32xf32>
    %c0_15 = arith.constant 0 : index
    %c0_16 = arith.constant 0 : index
    %33 = vector.load %arg5[%c0_15, %c0_16] : memref<1x32xf32, #tpu.memory_space<vmem>>, vector<1x32xf32>
    %34 = vector.broadcast %33 : vector<1x32xf32> to vector<128x32xf32>
    %35 = arith.addf %32, %34 : vector<128x32xf32>
    %cst_17 = arith.constant 5.000000e-01 : f32
    %36 = vector.broadcast %cst_17 : f32 to vector<128x32xf32>
    %37 = arith.mulf %36, %35 : vector<128x32xf32>
    %38 = math.tanh %37 : vector<128x32xf32>
    %cst_18 = arith.constant 5.000000e-01 : f32
    %39 = vector.broadcast %cst_18 : f32 to vector<128x32xf32>
    %40 = arith.mulf %39, %38 : vector<128x32xf32>
    %cst_19 = arith.constant 5.000000e-01 : f32
    %41 = vector.broadcast %cst_19 : f32 to vector<128x32xf32>
    %42 = arith.addf %41, %40 : vector<128x32xf32>
    %43 = arith.mulf %35, %42 : vector<128x32xf32>
    %cst_20 = arith.constant 0.909090936 : f32
    %44 = vector.broadcast %cst_20 : f32 to vector<128x32xf32>
    %45 = arith.mulf %43, %44 : vector<128x32xf32>
    %46 = arith.truncf %45 : vector<128x32xf32> to vector<128x32xbf16>
    %c0_21 = arith.constant 0 : index
    %c0_22 = arith.constant 0 : index
    %47 = vector.load %arg6[%c0_21, %c0_22] : memref<32x32xbf16, #tpu.memory_space<vmem>>, vector<32x32xbf16>
    %cst_23 = arith.constant dense<0.000000e+00> : vector<128x32xf32>
    %48 = tpu.matmul %46, %47, %cst_23 {dimension_numbers = #tpu.dot_dimension_numbers<[1], [1], [0], [0], [0, 0, 1, 0], [], []>} : vector<128x32xbf16>, vector<32x32xbf16>, vector<128x32xf32> -> vector<128x32xf32>
    %c0_24 = arith.constant 0 : index
    %c0_25 = arith.constant 0 : index
    %49 = vector.load %arg7[%c0_24, %c0_25] : memref<1x32xf32, #tpu.memory_space<vmem>>, vector<1x32xf32>
    %50 = vector.broadcast %49 : vector<1x32xf32> to vector<128x32xf32>
    %51 = arith.addf %48, %50 : vector<128x32xf32>
    %52 = arith.index_cast %1 : i32 to index
    %c0_26 = arith.constant 0 : index
    %53 = vector.load %arg1[%52, %c0_26] : memref<256x32xf32, #tpu.memory_space<vmem>>, vector<128x32xf32>
    %54 = arith.addf %53, %51 : vector<128x32xf32>
    %55 = arith.index_cast %1 : i32 to index
    %c0_27 = arith.constant 0 : index
    %56 = vector.load %arg8[%55, %c0_27] : memref<256x32xf32, #tpu.memory_space<vmem>>, vector<128x32xf32>
    tpu.vector_store %arg8[%55, %c0_27], %54 {strides = array<i32>} : memref<256x32xf32, #tpu.memory_space<vmem>>, vector<128x32xf32>,
    %cst_28 = arith.constant 1.000000e+00 : f32
    %57 = vector.broadcast %cst_28 : f32 to vector<128x32xf32>
    %58 = arith.addf %57, %51 : vector<128x32xf32>
    %59 = math.absf %58 : vector<128x32xf32>
    %60 = math.log %59 : vector<128x32xf32>
    %cst_29 = arith.constant dense<0.000000e+00> : vector<128xf32>
    %61 = vector.multi_reduction <add>, %60, %cst_29 [1] : vector<128x32xf32> to vector<128xf32>
    %62 = vector.shape_cast %61 : vector<128xf32> to vector<128x1xf32>
    %63 = arith.index_cast %1 : i32 to index
    %c0_30 = arith.constant 0 : index
    %64 = vector.load %arg9[%63, %c0_30] : memref<256x1xf32, #tpu.memory_space<vmem>>, vector<128x1xf32>
    tpu.vector_store %arg9[%63, %c0_30], %62 {strides = array<i32>} : memref<256x1xf32, #tpu.memory_space<vmem>>, vector<128x1xf32>,
    %c1_i32 = arith.constant 1 : i32
    %c128_i32_31 = arith.constant 128 : i32
    %65 = arith.muli %c1_i32, %c128_i32_31 : i32
    %66 = tpu.assume_multiple %65, 128 : i32
    %67 = arith.index_cast %66 : i32 to index
    %c0_32 = arith.constant 0 : index
    %68 = vector.load %arg1[%67, %c0_32] : memref<256x32xf32, #tpu.memory_space<vmem>>, vector<128x32xf32>
    %cst_33 = arith.constant 5.000000e-01 : f32
    %69 = vector.broadcast %cst_33 : f32 to vector<128x32xf32>
    %70 = arith.mulf %69, %68 : vector<128x32xf32>
    %71 = math.tanh %70 : vector<128x32xf32>
    %cst_34 = arith.constant 5.000000e-01 : f32
    %72 = vector.broadcast %cst_34 : f32 to vector<128x32xf32>
    %73 = arith.mulf %72, %71 : vector<128x32xf32>
    %cst_35 = arith.constant 5.000000e-01 : f32
    %74 = vector.broadcast %cst_35 : f32 to vector<128x32xf32>
    %75 = arith.addf %74, %73 : vector<128x32xf32>
    %76 = arith.mulf %68, %75 : vector<128x32xf32>
    %cst_36 = arith.constant 0.909090936 : f32
    %77 = vector.broadcast %cst_36 : f32 to vector<128x32xf32>
    %78 = arith.mulf %76, %77 : vector<128x32xf32>
    %79 = arith.truncf %78 : vector<128x32xf32> to vector<128x32xbf16>
    %c0_37 = arith.constant 0 : index
    %c0_38 = arith.constant 0 : index
    %80 = vector.load %arg2[%c0_37, %c0_38] : memref<32x32xbf16, #tpu.memory_space<vmem>>, vector<32x32xbf16>
    %cst_39 = arith.constant dense<0.000000e+00> : vector<128x32xf32>
    %81 = tpu.matmul %79, %80, %cst_39 {dimension_numbers = #tpu.dot_dimension_numbers<[1], [1], [0], [0], [0, 0, 1, 0], [], []>} : vector<128x32xbf16>, vector<32x32xbf16>, vector<128x32xf32> -> vector<128x32xf32>
    %c0_40 = arith.constant 0 : index
    %c0_41 = arith.constant 0 : index
    %82 = vector.load %arg3[%c0_40, %c0_41] : memref<1x32xf32, #tpu.memory_space<vmem>>, vector<1x32xf32>
    %83 = vector.broadcast %82 : vector<1x32xf32> to vector<128x32xf32>
    %84 = arith.addf %81, %83 : vector<128x32xf32>
    %cst_42 = arith.constant 5.000000e-01 : f32
    %85 = vector.broadcast %cst_42 : f32 to vector<128x32xf32>
    %86 = arith.mulf %85, %84 : vector<128x32xf32>
    %87 = math.tanh %86 : vector<128x32xf32>
    %cst_43 = arith.constant 5.000000e-01 : f32
    %88 = vector.broadcast %cst_43 : f32 to vector<128x32xf32>
    %89 = arith.mulf %88, %87 : vector<128x32xf32>
    %cst_44 = arith.constant 5.000000e-01 : f32
    %90 = vector.broadcast %cst_44 : f32 to vector<128x32xf32>
    %91 = arith.addf %90, %89 : vector<128x32xf32>
    %92 = arith.mulf %84, %91 : vector<128x32xf32>
    %cst_45 = arith.constant 0.909090936 : f32
    %93 = vector.broadcast %cst_45 : f32 to vector<128x32xf32>
    %94 = arith.mulf %92, %93 : vector<128x32xf32>
    %95 = arith.truncf %94 : vector<128x32xf32> to vector<128x32xbf16>
    %c0_46 = arith.constant 0 : index
    %c0_47 = arith.constant 0 : index
    %96 = vector.load %arg4[%c0_46, %c0_47] : memref<32x32xbf16, #tpu.memory_space<vmem>>, vector<32x32xbf16>
    %cst_48 = arith.constant dense<0.000000e+00> : vector<128x32xf32>
    %97 = tpu.matmul %95, %96, %cst_48 {dimension_numbers = #tpu.dot_dimension_numbers<[1], [1], [0], [0], [0, 0, 1, 0], [], []>} : vector<128x32xbf16>, vector<32x32xbf16>, vector<128x32xf32> -> vector<128x32xf32>
    %c0_49 = arith.constant 0 : index
    %c0_50 = arith.constant 0 : index
    %98 = vector.load %arg5[%c0_49, %c0_50] : memref<1x32xf32, #tpu.memory_space<vmem>>, vector<1x32xf32>
    %99 = vector.broadcast %98 : vector<1x32xf32> to vector<128x32xf32>
    %100 = arith.addf %97, %99 : vector<128x32xf32>
    %cst_51 = arith.constant 5.000000e-01 : f32
    %101 = vector.broadcast %cst_51 : f32 to vector<128x32xf32>
    %102 = arith.mulf %101, %100 : vector<128x32xf32>
    %103 = math.tanh %102 : vector<128x32xf32>
    %cst_52 = arith.constant 5.000000e-01 : f32
    %104 = vector.broadcast %cst_52 : f32 to vector<128x32xf32>
    %105 = arith.mulf %104, %103 : vector<128x32xf32>
    %cst_53 = arith.constant 5.000000e-01 : f32
    %106 = vector.broadcast %cst_53 : f32 to vector<128x32xf32>
    %107 = arith.addf %106, %105 : vector<128x32xf32>
    %108 = arith.mulf %100, %107 : vector<128x32xf32>
    %cst_54 = arith.constant 0.909090936 : f32
    %109 = vector.broadcast %cst_54 : f32 to vector<128x32xf32>
    %110 = arith.mulf %108, %109 : vector<128x32xf32>
    %111 = arith.truncf %110 : vector<128x32xf32> to vector<128x32xbf16>
    %c0_55 = arith.constant 0 : index
    %c0_56 = arith.constant 0 : index
    %112 = vector.load %arg6[%c0_55, %c0_56] : memref<32x32xbf16, #tpu.memory_space<vmem>>, vector<32x32xbf16>
    %cst_57 = arith.constant dense<0.000000e+00> : vector<128x32xf32>
    %113 = tpu.matmul %111, %112, %cst_57 {dimension_numbers = #tpu.dot_dimension_numbers<[1], [1], [0], [0], [0, 0, 1, 0], [], []>} : vector<128x32xbf16>, vector<32x32xbf16>, vector<128x32xf32> -> vector<128x32xf32>
    %c0_58 = arith.constant 0 : index
    %c0_59 = arith.constant 0 : index
    %114 = vector.load %arg7[%c0_58, %c0_59] : memref<1x32xf32, #tpu.memory_space<vmem>>, vector<1x32xf32>
    %115 = vector.broadcast %114 : vector<1x32xf32> to vector<128x32xf32>
    %116 = arith.addf %113, %115 : vector<128x32xf32>
    %117 = arith.index_cast %66 : i32 to index
    %c0_60 = arith.constant 0 : index
    %118 = vector.load %arg1[%117, %c0_60] : memref<256x32xf32, #tpu.memory_space<vmem>>, vector<128x32xf32>
    %119 = arith.addf %118, %116 : vector<128x32xf32>
    %120 = arith.index_cast %66 : i32 to index
    %c0_61 = arith.constant 0 : index
    %121 = vector.load %arg8[%120, %c0_61] : memref<256x32xf32, #tpu.memory_space<vmem>>, vector<128x32xf32>
    tpu.vector_store %arg8[%120, %c0_61], %119 {strides = array<i32>} : memref<256x32xf32, #tpu.memory_space<vmem>>, vector<128x32xf32>,
    %cst_62 = arith.constant 1.000000e+00 : f32
    %122 = vector.broadcast %cst_62 : f32 to vector<128x32xf32>
    %123 = arith.addf %122, %116 : vector<128x32xf32>
    %124 = math.absf %123 : vector<128x32xf32>
    %125 = math.log %124 : vector<128x32xf32>
    %cst_63 = arith.constant dense<0.000000e+00> : vector<128xf32>
    %126 = vector.multi_reduction <add>, %125, %cst_63 [1] : vector<128x32xf32> to vector<128xf32>
    %127 = vector.shape_cast %126 : vector<128xf32> to vector<128x1xf32>
    %128 = arith.index_cast %66 : i32 to index
    %c0_64 = arith.constant 0 : index
    %129 = vector.load %arg9[%128, %c0_64] : memref<256x1xf32, #tpu.memory_space<vmem>>, vector<128x1xf32>
    tpu.vector_store %arg9[%128, %c0_64], %127 {strides = array<i32>} : memref<256x1xf32, #tpu.memory_space<vmem>>, vector<128x1xf32>,
    %c2_i32 = arith.constant 2 : i32
    return
  }
  func.func @transform_0(%arg0: i32) -> (i32, i32) {
    %c0_i32 = arith.constant 0 : i32
    %c0_i32_0 = arith.constant 0 : i32
    return %arg0, %c0_i32 : i32, i32
  }
  func.func @transform_1(%arg0: i32) -> (i32, i32) {
    %c0_i32 = arith.constant 0 : i32
    %c0_i32_0 = arith.constant 0 : i32
    %c0_i32_1 = arith.constant 0 : i32
    return %c0_i32, %c0_i32_0 : i32, i32
  }
  func.func @transform_2(%arg0: i32) -> (i32, i32) {
    %c0_i32 = arith.constant 0 : i32
    %c0_i32_0 = arith.constant 0 : i32
    %c0_i32_1 = arith.constant 0 : i32
    return %c0_i32, %c0_i32_0 : i32, i32
  }
  func.func @transform_3(%arg0: i32) -> (i32, i32) {
    %c0_i32 = arith.constant 0 : i32
    %c0_i32_0 = arith.constant 0 : i32
    %c0_i32_1 = arith.constant 0 : i32
    return %c0_i32, %c0_i32_0 : i32, i32
  }
  func.func @transform_4(%arg0: i32) -> (i32, i32) {
    %c0_i32 = arith.constant 0 : i32
    %c0_i32_0 = arith.constant 0 : i32
    %c0_i32_1 = arith.constant 0 : i32
    return %c0_i32, %c0_i32_0 : i32, i32
  }
  func.func @transform_5(%arg0: i32) -> (i32, i32) {
    %c0_i32 = arith.constant 0 : i32
    %c0_i32_0 = arith.constant 0 : i32
    %c0_i32_1 = arith.constant 0 : i32
    return %c0_i32, %c0_i32_0 : i32, i32
  }
  func.func @transform_6(%arg0: i32) -> (i32, i32) {
    %c0_i32 = arith.constant 0 : i32
    %c0_i32_0 = arith.constant 0 : i32
    %c0_i32_1 = arith.constant 0 : i32
    return %c0_i32, %c0_i32_0 : i32, i32
  }
  func.func @transform_7(%arg0: i32) -> (i32, i32) {
    %c0_i32 = arith.constant 0 : i32
    %c0_i32_0 = arith.constant 0 : i32
    return %arg0, %c0_i32 : i32, i32
  }
  func.func @transform_8(%arg0: i32) -> (i32, i32) {
    %c0_i32 = arith.constant 0 : i32
    %c0_i32_0 = arith.constant 0 : i32
    return %arg0, %c0_i32 : i32, i32
  }
}

</mosaic_0001>

<bundles_post_ra>
// kernel: residual_block.1
= control target key start
LH: loop header
LB: loop body
LE: loop exit
PB: predicated region body
PF: predicated region fallthrough
CT: control target
= control target key end

     0   :  { %s2965_s27 = smov 0   ;;  %s3809_s0 = inlined_call_operand.vmem [shape: f32[512,32], index: 0, kind: input, shape index: {}]   ;;  %s3810_s1 = inlined_call_operand.vmem [shape: bf16[32,32], index: 1, kind: input, shape index: {}]   ;;  %s3811_s2 = inlined_call_operand.vmem [shape: f32[1,32], index: 2, kind: input, shape index: {}]   ;;  %s3812_s3 = inlined_call_operand.vmem [shape: bf16[32,32], index: 3, kind: input, shape index: {}]   ;;  %s3813_s4 = inlined_call_operand.vmem [shape: f32[1,32], index: 4, kind: input, shape index: {}]   ;;  %s3814_s5 = inlined_call_operand.vmem [shape: bf16[32,32], index: 5, kind: input, shape index: {}]   ;;  %s3815_s6 = inlined_call_operand.vmem [shape: f32[1,32], index: 6, kind: input, shape index: {}]   ;;  %s3816_s7 = inlined_call_operand.vmem [shape: f32[512,32], index: 7, kind: output, shape index: {0}]   ;;  %s3817_s8 = inlined_call_operand.vmem [shape: f32[512,1], index: 8, kind: output, shape index: {1}]  }
   0x1 LB: > { %s2283_s28 = sadd.s32 4294967295, %s2918_s27   ;;  %p2287_p0 = scmp.ge.s32.totalorder %s2918_s27, 1  ;;  %s2918_s27 = sphi %s2965_s27, %s19_s27  }
   0x2   : > { %p266_p1 = scmp.lt.s32.totalorder %s2918_s27, 3 }
   0x4   : > { %p267_p2 = pnand %p2287_p0, %p266_p1 }
   0x5   : > { %s2288_s11 = sshll.u32 (!%p267_p2), %s2283_s28, 5 }
   0x6   : > { %270 = sbr.rel (%p267_p2) target bundleno = 1152 (0x480), region = 48  ;;  %p306_p3 = scmp.lt.s32.totalorder (!%p267_p2), %s2288_s11, 63 }
   0xb   : > { %v2610_v0 = vld [vmem:[%s3810_s1 + $0x8] sm:$0xff]   ;;  %vm465_vm0 = vcmask 261120   ;;  %v2611_v1 = vld [vmem:[%s3810_s1] sm:$0xff]   ;;  %s3819_s11 = smov (!%p306_p3, %s2288_s11), 63  ;;  %vm1241_vm1 = vcmask 7168  }
   0xc   : > { %2590 = vmatprep.subr.msk.bf16.mxu0 %vm465_vm0, %v2610_v0  ;;  %v494_v2 = vsel %vm465_vm0, %v2610_v0, 0  ;;  %s2982_s12 = sshll.u32 %s3819_s11, 3  ;;  %v491_v3 = vsel %vm465_vm0, %v2611_v1, 0 }
   0xd   : > { %2471 = vmatpush3.bf16.xpose.msra.mxu0 %v494_v2  ;;  %s2988_s15 = scalar_lea.vmem %s3809_s0, %s2982_s12  ;;  %s3486_s28 = scalar_lea.vmem %s3816_s7, %s2982_s12 }
   0xe   : > { %2591 = vmatprep.subr.msk.bf16.mxu0 %vm465_vm0, %v2611_v1  ;;  %v324_v4 = vld [vmem:[%s2988_s15] sm:$0xff]  ;;  %v2993_v5 = vld [vmem:[%s2988_s15 + $0x8] sm:$0xff]  ;;  %v2996_v6 = vld [vmem:[%s2988_s15 + $0x10] sm:$0xff]  ;;  %s3660_s11 = scalar_lea.vmem %s3817_s8, %s2982_s12 }
   0xf   : > { %v340_v7 = vmul.f32 0.5, %v324_v4  ;;  %v341_v8 = vmul.f32 0.5, %v2993_v5  ;;  %v3000_v9 = vld [vmem:[%s2988_s15 + $0x18] sm:$0xff]  ;;  %v342_v10 = vmul.f32 0.5, %v2996_v6  ;;  %v3004_v11 = vld [vmem:[%s2988_s15 + $0x20] sm:$0xff]  ;;  %v3007_v12 = vld [vmem:[%s2988_s15 + $0x28] sm:$0xff] }
  0x10   : > { %v343_v13 = vmul.f32 0.5, %v3000_v9  ;;  %v3011_v14 = vld [vmem:[%s2988_s15 + $0x30] sm:$0xff]  ;;  %v3014_v15 = vld [vmem:[%s2988_s15 + $0x38] sm:$0xff]  ;;  %v344_v16 = vmul.f32 0.5, %v3004_v11  ;;  %v3018_v17 = vld [vmem:[%s2988_s15 + $0x40] sm:$0xff]  ;;  %v345_v18 = vmul.f32 0.5, %v3007_v12 }
  0x11   : > { %2622 = vtanh.f32 %v340_v7  ;;  %v346_v19 = vmul.f32 0.5, %v3011_v14  ;;  %v347_v20 = vmul.f32 0.5, %v3014_v15  ;;  %v3024_v21 = vld [vmem:[%s2988_s15 + $0x48] sm:$0xff]  ;;  %v3027_v22 = vld [vmem:[%s2988_s15 + $0x50] sm:$0xff]  ;;  %v348_v23 = vmul.f32 0.5, %v3018_v17  ;;  %v3031_v24 = vld [vmem:[%s2988_s15 + $0x58] sm:$0xff] }
  0x12   : > { %2624 = vtanh.f32 %v341_v8  ;;  %v349_v25 = vmul.f32 0.5, %v3024_v21  ;;  %v3035_v26 = vld [vmem:[%s2988_s15 + $0x60] sm:$0xff]  ;;  %v350_v27 = vmul.f32 0.5, %v3027_v22  ;;  %v3039_v28 = vld [vmem:[%s2988_s15 + $0x68] sm:$0xff]  ;;  %v351_v29 = vmul.f32 0.5, %v3031_v24  ;;  %v3043_v30 = vld [vmem:[%s2988_s15 + $0x70] sm:$0xff] }
  0x13   : > { %2626 = vtanh.f32 %v342_v10  ;;  %v352_v31 = vmul.f32 0.5, %v3035_v26  ;;  %v3047_v32 = vld [vmem:[%s2988_s15 + $0x78] sm:$0xff]  ;;  %v353_v33 = vmul.f32 0.5, %v3039_v28  ;;  %v354_v34 = vmul.f32 0.5, %v3043_v30 }
  0x14   : > { %2628 = vtanh.f32 %v343_v13  ;;  %v355_v35 = vmul.f32 0.5, %v3047_v32 }
  0x15   : > { %2473 = vmatpush3.bf16.xpose.msra.mxu0 %v491_v3  ;;  %2630 = vtanh.f32 %v344_v16 }
  0x16   : > { %2632 = vtanh.f32 %v345_v18 }
  0x17   : > { %2634 = vtanh.f32 %v346_v19 }
  0x18   : > { %2636 = vtanh.f32 %v347_v20 }
  0x19   : > { %2638 = vtanh.f32 %v348_v23 }
  0x1a   : > { %2640 = vtanh.f32 %v349_v25 }
  0x1b   : > { %2642 = vtanh.f32 %v350_v27 }
  0x1c   : > { %2644 = vtanh.f32 %v351_v29 }
  0x1d   : > { %2646 = vtanh.f32 %v352_v31 }
  0x1e   : > { %v2623_v36 = vpop.eup %2622  ;;  %2648 = vtanh.f32 %v353_v33 }
  0x1f   : > { %v2625_v37 = vpop.eup %2624  ;;  %v372_v38 = vmul.f32 0.5, %v2623_v36  ;;  %2650 = vtanh.f32 %v354_v34 }
  0x20   : > { %v2627_v39 = vpop.eup %2626  ;;  %v373_v40 = vmul.f32 0.5, %v2625_v37  ;;  %2652 = vtanh.f32 %v355_v35 }
  0x21   : > { %v2629_v41 = vpop.eup %2628  ;;  %v388_v42 = vadd.f32 0.5, %v372_v38  ;;  %v374_v43 = vmul.f32 0.5, %v2627_v39 }
  0x22   : > { %v2631_v44 = vpop.eup %2630  ;;  %v389_v45 = vadd.f32 0.5, %v373_v40  ;;  %v375_v46 = vmul.f32 0.5, %v2629_v41 }
  0x23   : > { %v2633_v47 = vpop.eup %2632  ;;  %v404_v48 = vmul.f32 %v388_v42, %v324_v4  ;;  %v390_v49 = vadd.f32 0.5, %v374_v43  ;;  %v376_v50 = vmul.f32 0.5, %v2631_v44 }
  0x24   : > { %v2635_v51 = vpop.eup %2634  ;;  %v405_v52 = vmul.f32 %v389_v45, %v2993_v5  ;;  %v391_v53 = vadd.f32 0.5, %v375_v46  ;;  %v377_v54 = vmul.f32 0.5, %v2633_v47 }
  0x25   : > { %v2637_v55 = vpop.eup %2636  ;;  %v420_v56 = vmul.f32 0.90909094, %v404_v48  ;;  %v406_v57 = vmul.f32 %v390_v49, %v2996_v6  ;;  %v392_v58 = vadd.f32 0.5, %v376_v50  ;;  %v378_v59 = vmul.f32 0.5, %v2635_v51 }
  0x26   : > { %v2639_v60 = vpop.eup %2638  ;;  %v421_v61 = vmul.f32 0.90909094, %v405_v52  ;;  %v407_v62 = vmul.f32 %v391_v53, %v3000_v9  ;;  %v393_v63 = vadd.f32 0.5, %v377_v54  ;;  %v379_v0 = vmul.f32 0.5, %v2637_v55 }
  0x27   : > { %v2641_v1 = vpop.eup %2640  ;;  %v422_v2 = vmul.f32 0.90909094, %v406_v57  ;;  %v408_v3 = vmul.f32 %v392_v58, %v3004_v11  ;;  %v394_v4 = vadd.f32 0.5, %v378_v59  ;;  %v380_v5 = vmul.f32 0.5, %v2639_v60 }
  0x28   : > { %v2643_v7 = vpop.eup %2642  ;;  %v436_v8 = vpack.c.bf16 %v421_v61, %v420_v56  ;;  %v423_v10 = vmul.f32 0.90909094, %v407_v62  ;;  %v409_v13 = vmul.f32 %v393_v63, %v3007_v12  ;;  %v395_v6 = vadd.f32 0.5, %v379_v0  ;;  %v2612_v62 = vld [vmem:[%s3812_s3 + $0x8] sm:$0xff]  }
  0x29   : > { %v2645_v16 = vpop.eup %2644  ;;  %v424_v18 = vmul.f32 0.90909094, %v408_v3  ;;  %v410_v19 = vmul.f32 %v394_v4, %v3011_v14  ;;  %v381_v20 = vmul.f32 0.5, %v2641_v1  ;;  %v396_v9 = vadd.f32 0.5, %v380_v5  ;;  %2592 = vmatprep.subr.msk.bf16.mxu1 %vm465_vm0, %v2612_v62  ;;  %v3088_v0 = vld [vmem:[%s3810_s1 + $0x8] sm:$0xff]  }
  0x2a   : > { %v2647_v23 = vpop.eup %2646  ;;  %2474 = vmatprep.mubr.msk.bf16.mxu0 %vm465_vm0, %v436_v8  ;;  %v437_v25 = vpack.c.bf16 %v423_v10, %v422_v2  ;;  %v425_v27 = vmul.f32 0.90909094, %v409_v13  ;;  %v411_v11 = vmul.f32 %v395_v6, %v3014_v15  ;;  %v382_v29 = vmul.f32 0.5, %v2643_v7  ;;  %v3095_v1 = vld [vmem:[%s3811_s2] ss:$0 sm:$0xff] }
  0x2b   : > { %v2649_v31 = vpop.eup %2648  ;;  %v426_v33 = vmul.f32 0.90909094, %v410_v19  ;;  %v397_v34 = vadd.f32 0.5, %v381_v20  ;;  %v412_v12 = vmul.f32 %v396_v9, %v3018_v17  ;;  %v383_v35 = vmul.f32 0.5, %v2645_v16 }
  0x2c   : > { %v2651_v36 = vpop.eup %2650  ;;  %2475 = vmatmul.mubr.msk.bf16.vlgmr.msra.gmra.mxu0 %vm465_vm0, %v437_v25  ;;  %v438_v14 = vpack.c.bf16 %v425_v27, %v424_v18  ;;  %v427_v37 = vmul.f32 0.90909094, %v411_v11  ;;  %v398_v38 = vadd.f32 0.5, %v382_v29  ;;  %v384_v39 = vmul.f32 0.5, %v2647_v23  ;;  %v3121_v11 = vld [vmem:[%s2988_s15 + $0x80] sm:$0xff] }
  0x2d   : > { %v2653_v40 = vpop.eup %2652  ;;  %v413_v41 = vmul.f32 %v397_v34, %v3024_v21  ;;  %v428_v42 = vmul.f32 0.90909094, %v412_v12  ;;  %v399_v43 = vadd.f32 0.5, %v383_v35  ;;  %v385_v15 = vmul.f32 0.5, %v2649_v31  ;;  %v3128_v34 = vld [vmem:[%s2988_s15 + $0x88] sm:$0xff] }
  0x2e   : > { %2478 = vmatprep.mubr.msk.bf16.mxu0 %vm465_vm0, %v438_v14  ;;  %v400_v44 = vadd.f32 0.5, %v384_v39  ;;  %v439_v45 = vpack.c.bf16 %v427_v37, %v426_v33  ;;  %v414_v47 = vmul.f32 %v398_v38, %v3027_v22  ;;  %v386_v49 = vmul.f32 0.5, %v2651_v36  ;;  %v3136_v37 = vld [vmem:[%s2988_s15 + $0x90] sm:$0xff] }
  0x2f   : > { %v429_v46 = vmul.f32 0.90909094, %v413_v41  ;;  %v401_v17 = vadd.f32 0.5, %v385_v15  ;;  %v415_v48 = vmul.f32 %v399_v43, %v3031_v24  ;;  %v387_v50 = vmul.f32 0.5, %v2653_v40  ;;  %v3147_v43 = vld [vmem:[%s2988_s15 + $0xa0] sm:$0xff] }
  0x30   : > { %v416_v52 = vmul.f32 %v400_v44, %v3035_v26  ;;  %v430_v53 = vmul.f32 0.90909094, %v414_v47  ;;  %v402_v55 = vadd.f32 0.5, %v386_v49  ;;  %v1275_v35 = vmul.f32 0.5, %v3121_v11 }
  0x31   : > { %v440_v51 = vpack.c.bf16 %v429_v46, %v428_v42  ;;  %v417_v21 = vmul.f32 %v401_v17, %v3039_v28  ;;  %v431_v54 = vmul.f32 0.90909094, %v415_v48  ;;  %v403_v56 = vadd.f32 0.5, %v387_v50  ;;  %v3144_v42 = vld [vmem:[%s2988_s15 + $0x98] sm:$0xff] }
  0x32   : > { %v432_v57 = vmul.f32 0.90909094, %v416_v52  ;;  %v418_v24 = vmul.f32 %v402_v55, %v3043_v30  ;;  %v746_v30 = vsel %vm465_vm0, %v2612_v62, 0  ;;  %v1276_v39 = vmul.f32 0.5, %v3128_v34 }
  0x33   : > { %v433_v58 = vmul.f32 0.90909094, %v417_v21  ;;  %v441_v22 = vpack.c.bf16 %v431_v54, %v430_v53  ;;  %v419_v59 = vmul.f32 %v403_v56, %v3047_v32  ;;  %2491 = vmatpush3.bf16.xpose.msra.mxu1 %v746_v30  ;;  %v2613_v32 = vld [vmem:[%s3812_s3] sm:$0xff]   ;;  %v1278_v50 = vmul.f32 0.5, %v3144_v42  ;;  %v3158_v54 = vld [vmem:[%s2988_s15 + $0xa8] sm:$0xff] }
  0x34   : > { %2479 = vmatmul.mubr.msk.bf16.gmra.mxu0 %vm465_vm0, %v439_v45  ;;  %v434_v26 = vmul.f32 0.90909094, %v418_v24  ;;  %2593 = vmatprep.subr.msk.bf16.mxu1 %vm465_vm0, %v2613_v32  ;;  %v743_v63 = vsel %vm465_vm0, %v2613_v32, 0  ;;  %v1277_v45 = vmul.f32 0.5, %v3136_v37  ;;  %v3170_v32 = vld [vmem:[%s2988_s15 + $0xb0] sm:$0xff] }
  0x35   : > { %2482 = vmatprep.mubr.msk.bf16.mxu0 %vm465_vm0, %v440_v51  ;;  %v442_v60 = vpack.c.bf16 %v433_v58, %v432_v57  ;;  %v435_v28 = vmul.f32 0.90909094, %v419_v59  ;;  %v1279_v51 = vmul.f32 0.5, %v3147_v43 }
  0x37   : > { %v443_v61 = vpack.c.bf16 %v435_v28, %v434_v26  ;;  %v1280_v28 = vmul.f32 0.5, %v3158_v54 }
  0x3b   : > { %2493 = vmatpush3.bf16.xpose.msra.mxu1 %v743_v63 }
  0x3c   : > { %2483 = vmatmul.mubr.msk.bf16.gmra.mxu0 %vm465_vm0, %v441_v22  ;;  %2596 = vmatprep.subr.msk.bf16.mxu1 %vm465_vm0, %v3088_v0 }
  0x3d   : > { %2486 = vmatprep.mubr.msk.bf16.mxu0 %vm465_vm0, %v442_v60 }
  0x44   : > { %2487 = vmatmul.mubr.msk.bf16.gmra.mxu0 %vm465_vm0, %v443_v61 }
  0xec   : > { %v2476_v2 = vpop.f32.mrf.mxu0 }
  0xed   : > { %v3098_v3 = vadd.f32 %v2476_v2, %v3095_v1 }
  0xee   : > { %v530_v4 = vpop.f32.mrf.mxu0 }
  0xef   : > { %v595_v5 = vmul.f32 0.5, %v3098_v3  ;;  %v3102_v7 = vadd.f32 %v3095_v1, %v530_v4 }
  0xf0   : > { %v2477_v8 = vpop.f32.mrf.mxu0 }
  0xf1   : > { %2654 = vtanh.f32 %v595_v5  ;;  %v593_v10 = vmul.f32 0.5, %v3102_v7  ;;  %v3106_v13 = vadd.f32 %v2477_v8, %v3095_v1 }
  0xf2   : > { %v533_v6 = vpop.f32.mrf.mxu0 }
  0xf3   : > { %2656 = vtanh.f32 %v593_v10  ;;  %v596_v16 = vmul.f32 0.5, %v3106_v13  ;;  %v3110_v18 = vadd.f32 %v3095_v1, %v533_v6 }
  0xf4   : > { %v2480_v19 = vpop.f32.mrf.mxu0 }
  0xf5   : > { %2658 = vtanh.f32 %v596_v16  ;;  %v594_v20 = vmul.f32 0.5, %v3110_v18  ;;  %v3114_v9 = vadd.f32 %v2480_v19, %v3095_v1 }
  0xf6   : > { %v546_v23 = vpop.f32.mrf.mxu0 }
  0xf7   : > { %2660 = vtanh.f32 %v594_v20  ;;  %v599_v25 = vmul.f32 0.5, %v3114_v9  ;;  %v3118_v27 = vadd.f32 %v3095_v1, %v546_v23 }
  0xf8   : > { %v2481_v29 = vpop.f32.mrf.mxu0 }
  0xf9   : > { %2662 = vtanh.f32 %v599_v25  ;;  %v597_v31 = vmul.f32 0.5, %v3118_v27  ;;  %v3125_v33 = vadd.f32 %v2481_v29, %v3095_v1  ;;  %v1281_v25 = vmul.f32 0.5, %v3170_v32 }
  0xfa   : > { %v549_v12 = vpop.f32.mrf.mxu0 }
  0xfb   : > { %2664 = vtanh.f32 %v597_v31  ;;  %v600_v36 = vmul.f32 0.5, %v3125_v33  ;;  %v3133_v14 = vadd.f32 %v3095_v1, %v549_v12 }
  0xfc   : > { %v2484_v38 = vpop.f32.mrf.mxu0 }
  0xfd   : > { %2666 = vtanh.f32 %v600_v36  ;;  %v598_v40 = vmul.f32 0.5, %v3133_v14  ;;  %v3141_v41 = vadd.f32 %v2484_v38, %v3095_v1 }
  0xfe   : > { %v2655_v15 = vpop.eup %2654  ;;  %v562_v44 = vpop.f32.mrf.mxu0  ;;  %2668 = vtanh.f32 %v1275_v35 }
  0xff   : > { %v627_v46 = vmul.f32 0.5, %v2655_v15  ;;  %2670 = vtanh.f32 %v598_v40  ;;  %v603_v17 = vmul.f32 0.5, %v3141_v41  ;;  %v3152_v47 = vadd.f32 %v3095_v1, %v562_v44 }
 0x100   : > { %v2657_v48 = vpop.eup %2656  ;;  %v2485_v49 = vpop.f32.mrf.mxu0  ;;  %2672 = vtanh.f32 %v1276_v39  ;;  %v3189_v39 = vld [vmem:[%s2988_s15 + $0xb8] sm:$0xff] }
 0x101   : > { %v643_v52 = vadd.f32 0.5, %v627_v46  ;;  %v625_v21 = vmul.f32 0.5, %v2657_v48  ;;  %2674 = vtanh.f32 %v603_v17  ;;  %v601_v53 = vmul.f32 0.5, %v3152_v47 }
 0x102   : > { %v2659_v55 = vpop.eup %2658  ;;  %v3161_v56 = vadd.f32 %v2485_v49, %v3095_v1  ;;  %v565_v57 = vpop.f32.mrf.mxu0  ;;  %2676 = vtanh.f32 %v1277_v45 }
 0x103   : > { %v641_v58 = vadd.f32 0.5, %v625_v21  ;;  %v628_v22 = vmul.f32 0.5, %v2659_v55  ;;  %2678 = vtanh.f32 %v601_v53  ;;  %v3165_v60 = vadd.f32 %v3095_v1, %v565_v57 }
 0x104   : > { %v2661_v24 = vpop.eup %2660  ;;  %v604_v59 = vmul.f32 0.5, %v3161_v56  ;;  %v2488_v26 = vpop.f32.mrf.mxu0  ;;  %2680 = vtanh.f32 %v1278_v50  ;;  %v659_v61 = vmul.f32 %v643_v52, %v3098_v3  ;;  %v1428_v21 = vsel %vm465_vm0, %v3088_v0, 0  ;;  %v3208_v0 = vld [vmem:[%s2988_s15 + $0xc8] sm:$0xff] }
 0x105   : > { %v644_v62 = vadd.f32 0.5, %v628_v22  ;;  %v626_v30 = vmul.f32 0.5, %v2661_v24  ;;  %2682 = vtanh.f32 %v1279_v51  ;;  %v602_v2 = vmul.f32 0.5, %v3165_v60  ;;  %v2615_v24 = vld [vmem:[%s3810_s1] sm:$0xff]  }
 0x106   : > { %v2663_v63 = vpop.eup %2662  ;;  %2684 = vtanh.f32 %v604_v59  ;;  %v3174_v4 = vadd.f32 %v2488_v26, %v3095_v1  ;;  %v578_v5 = vpop.f32.mrf.mxu0  ;;  %v657_v8 = vmul.f32 %v641_v58, %v3102_v7  ;;  %v675_v29 = vmul.f32 0.90909094, %v659_v61  ;;  %v3203_v59 = vld [vmem:[%s2988_s15 + $0xc0] sm:$0xff] }
 0x107   : > { %v660_v10 = vmul.f32 %v644_v62, %v3106_v13  ;;  %v642_v6 = vadd.f32 0.5, %v626_v30  ;;  %v631_v16 = vmul.f32 0.5, %v2663_v63  ;;  %2686 = vtanh.f32 %v602_v2 }
 0x108   : > { %v2665_v3 = vpop.eup %2664  ;;  %v607_v19 = vmul.f32 0.5, %v3174_v4  ;;  %v3180_v20 = vadd.f32 %v3095_v1, %v578_v5  ;;  %v2489_v23 = vpop.f32.mrf.mxu0  ;;  %2688 = vtanh.f32 %v1280_v28  ;;  %v673_v15 = vmul.f32 0.90909094, %v657_v8 }
 0x109   : > { %v658_v31 = vmul.f32 %v642_v6, %v3110_v18  ;;  %v629_v12 = vmul.f32 0.5, %v2665_v3  ;;  %v676_v13 = vmul.f32 0.90909094, %v660_v10  ;;  %v3186_v36 = vadd.f32 %v2489_v23, %v3095_v1 }
 0x10a   : > { %v2667_v7 = vpop.eup %2666  ;;  %2690 = vtanh.f32 %v607_v19  ;;  %v605_v35 = vmul.f32 0.5, %v3180_v20  ;;  %v581_v38 = vpop.f32.mrf.mxu0  ;;  %v647_v45 = vadd.f32 0.5, %v631_v16  ;;  %v1282_v53 = vmul.f32 0.5, %v3189_v39 }
 0x10b   : > { %v2669_v40 = vpop.eup %2668  ;;  %v674_v44 = vmul.f32 0.90909094, %v658_v31  ;;  %v645_v46 = vadd.f32 0.5, %v629_v12  ;;  %v632_v18 = vmul.f32 0.5, %v2667_v7  ;;  %v608_v48 = vmul.f32 0.5, %v3186_v36 }
 0x10c   : > { %v2671_v17 = vpop.eup %2670  ;;  %2692 = vtanh.f32 %v605_v35  ;;  %v3193_v49 = vadd.f32 %v3095_v1, %v581_v38  ;;  %v690_v57 = vpack.c.bf16 %v676_v13, %v675_v29  ;;  %v663_v30 = vmul.f32 %v647_v45, %v3114_v9  ;;  %v3222_v13 = vld [vmem:[%s2988_s15 + $0xd8] sm:$0xff] }
 0x10d   : > { %v2673_v50 = vpop.eup %2672  ;;  %v630_v51 = vmul.f32 0.5, %v2671_v17  ;;  %v689_v52 = vpack.c.bf16 %v674_v44, %v673_v15  ;;  %v648_v58 = vadd.f32 0.5, %v632_v18  ;;  %2694 = vtanh.f32 %v608_v48 }
 0x10e   : > { %v2675_v55 = vpop.eup %2674  ;;  %v606_v22 = vmul.f32 0.5, %v3193_v49  ;;  %v661_v28 = vmul.f32 %v645_v46, %v3118_v27  ;;  %2696 = vtanh.f32 %v1281_v25  ;;  %v1283_v10 = vmul.f32 0.5, %v3203_v59 }
 0x10f   : > { %v2677_v26 = vpop.eup %2676  ;;  %v646_v61 = vadd.f32 0.5, %v630_v51  ;;  %2494 = vmatprep.mubr.msk.bf16.mxu1 %vm465_vm0, %v689_v52  ;;  %v664_v63 = vmul.f32 %v648_v58, %v3125_v33  ;;  %v635_v8 = vmul.f32 0.5, %v2675_v55  ;;  %v1284_v9 = vmul.f32 0.5, %v3208_v0  ;;  %v3218_v33 = vld [vmem:[%s2988_s15 + $0xd0] sm:$0xff] }
 0x110   : > { %v2679_v62 = vpop.eup %2678  ;;  %2698 = vtanh.f32 %v606_v22  ;;  %2495 = vmatmul.mubr.msk.bf16.vlgmr.msra.gmra.mxu1 %vm465_vm0, %v690_v57  ;;  %v677_v19 = vmul.f32 0.90909094, %v661_v28  ;;  %v1307_v25 = vmul.f32 0.5, %v2669_v40  ;;  %v679_v29 = vmul.f32 0.90909094, %v663_v30  ;;  %v3226_v40 = vld [vmem:[%s2988_s15 + $0xe0] sm:$0xff] }
 0x111   : > { %v2681_v2 = vpop.eup %2680  ;;  %v662_v5 = vmul.f32 %v646_v61, %v3133_v14  ;;  %v633_v27 = vmul.f32 0.5, %v2679_v62  ;;  %2531 = vmatpush3.bf16.xpose.msra.mxu1 %v1428_v21  ;;  %v680_v16 = vmul.f32 0.90909094, %v664_v63  ;;  %2700 = vtanh.f32 %v1282_v53  ;;  %v3231_v21 = vld [vmem:[%s2988_s15 + $0xe8] sm:$0xff] }
 0x112   : > { %v2683_v6 = vpop.eup %2682  ;;  %2597 = vmatprep.subr.msk.bf16.mxu1 %vm465_vm0, %v2615_v24  ;;  %v1425_v14 = vsel %vm465_vm0, %v2615_v24, 0  ;;  %v1308_v7 = vmul.f32 0.5, %v2673_v50  ;;  %v651_v15 = vadd.f32 0.5, %v635_v8  ;;  %2702 = vtanh.f32 %v1283_v10 }
 0x113   : > { %v2685_v3 = vpop.eup %2684  ;;  %v678_v23 = vmul.f32 0.90909094, %v662_v5  ;;  %v649_v31 = vadd.f32 0.5, %v633_v27  ;;  %v1285_v44 = vmul.f32 0.5, %v3218_v33  ;;  %v692_v46 = vpack.c.bf16 %v680_v16, %v679_v29 }
 0x114   : > { %v636_v12 = vmul.f32 0.5, %v2685_v3  ;;  %v2687_v35 = vpop.eup %2686  ;;  %2704 = vtanh.f32 %v1284_v9  ;;  %v1323_v50 = vadd.f32 0.5, %v1307_v25  ;;  %v1309_v51 = vmul.f32 0.5, %v2677_v26 }
 0x115   : > { %v691_v38 = vpack.c.bf16 %v678_v23, %v677_v19  ;;  %v2689_v45 = vpop.eup %2688  ;;  %v634_v18 = vmul.f32 0.5, %v2687_v35  ;;  %v1286_v52 = vmul.f32 0.5, %v3222_v13  ;;  %v665_v53 = vmul.f32 %v649_v31, %v3152_v47  ;;  %v3242_v23 = vld [vmem:[%s2988_s15 + $0xf0] sm:$0xff] }
 0x116   : > { %v652_v17 = vadd.f32 0.5, %v636_v12  ;;  %v1324_v58 = vadd.f32 0.5, %v1308_v7  ;;  %v667_v24 = vmul.f32 %v651_v15, %v3141_v41  ;;  %v1310_v61 = vmul.f32 0.5, %v2681_v2 }
 0x117   : > { %v2691_v48 = vpop.eup %2690  ;;  %2498 = vmatprep.mubr.msk.bf16.mxu1 %vm465_vm0, %v691_v38  ;;  %v650_v57 = vadd.f32 0.5, %v634_v18  ;;  %v1287_v26 = vmul.f32 0.5, %v3226_v40  ;;  %2706 = vtanh.f32 %v1285_v44  ;;  %v1288_v47 = vmul.f32 0.5, %v3231_v21 }
 0x118   : > { %v668_v55 = vmul.f32 %v652_v17, %v3161_v56  ;;  %2499 = vmatmul.mubr.msk.bf16.gmra.mxu1 %vm465_vm0, %v692_v46  ;;  %v639_v28 = vmul.f32 0.5, %v2691_v48  ;;  %v1339_v5 = vmul.f32 %v3121_v11, %v1323_v50  ;;  %v1311_v8 = vmul.f32 0.5, %v2683_v6  ;;  %v3246_v11 = vld [vmem:[%s2988_s15 + $0xf8] sm:$0xff] }
 0x119   : > { %v2693_v22 = vpop.eup %2692  ;;  %2533 = vmatpush3.bf16.xpose.msra.mxu1 %v1425_v14  ;;  %v666_v62 = vmul.f32 %v650_v57, %v3165_v60  ;;  %2708 = vtanh.f32 %v1286_v52  ;;  %v681_v27 = vmul.f32 0.90909094, %v665_v53  ;;  %v1312_v16 = vmul.f32 0.5, %v2689_v45 }
 0x11a   : > { %v637_v30 = vmul.f32 0.5, %v2693_v22  ;;  %v2695_v56 = vpop.eup %2694  ;;  %v684_v63 = vmul.f32 0.90909094, %v668_v55  ;;  %v683_v3 = vmul.f32 0.90909094, %v667_v24  ;;  %v655_v60 = vadd.f32 0.5, %v639_v28 }
 0x11b   : > { %v2697_v41 = vpop.eup %2696  ;;  %v682_v10 = vmul.f32 0.90909094, %v666_v62  ;;  %v640_v19 = vmul.f32 0.5, %v2695_v56  ;;  %2710 = vtanh.f32 %v1287_v26  ;;  %v1340_v29 = vmul.f32 %v3128_v34, %v1324_v58 }
 0x11c   : > { %v653_v2 = vadd.f32 0.5, %v637_v30  ;;  %2712 = vtanh.f32 %v1288_v47  ;;  %v694_v31 = vpack.c.bf16 %v684_v63, %v683_v3  ;;  %v1325_v7 = vadd.f32 0.5, %v1309_v51 }
 0x11d   : > { %v2699_v9 = vpop.eup %2698  ;;  %v693_v14 = vpack.c.bf16 %v682_v10, %v681_v27  ;;  %v656_v12 = vadd.f32 0.5, %v640_v19  ;;  %v1326_v35 = vadd.f32 0.5, %v1310_v61  ;;  %v1327_v44 = vadd.f32 0.5, %v1311_v8 }
 0x11e   : > { %v638_v25 = vmul.f32 0.5, %v2699_v9  ;;  %v2701_v6 = vpop.eup %2700  ;;  %v669_v38 = vmul.f32 %v653_v2, %v3180_v20  ;;  %v1289_v45 = vmul.f32 0.5, %v3242_v23  ;;  %v671_v46 = vmul.f32 %v655_v60, %v3174_v4 }
 0x11f   : > { %2502 = vmatprep.mubr.msk.bf16.mxu1 %vm465_vm0, %v693_v14  ;;  %v672_v34 = vmul.f32 %v656_v12, %v3186_v36  ;;  %v1328_v17 = vadd.f32 0.5, %v1312_v16  ;;  %v1290_v18 = vmul.f32 0.5, %v3246_v11  ;;  %v2703_v48 = vpop.eup %2702  ;;  %v1355_v51 = vmul.f32 0.90909094, %v1339_v5 }
 0x120   : > { %v654_v15 = vadd.f32 0.5, %v638_v25  ;;  %2503 = vmatmul.mubr.msk.bf16.gmra.mxu1 %vm465_vm0, %v694_v31  ;;  %v1356_v20 = vmul.f32 0.90909094, %v1340_v29  ;;  %v1341_v55 = vmul.f32 %v3136_v37, %v1325_v7  ;;  %v1342_v57 = vmul.f32 %v3144_v42, %v1326_v35 }
 0x121   : > { %v2705_v52 = vpop.eup %2704  ;;  %v688_v53 = vmul.f32 0.90909094, %v672_v34  ;;  %v1313_v58 = vmul.f32 0.5, %v2697_v41  ;;  %v685_v4 = vmul.f32 0.90909094, %v669_v38  ;;  %v1314_v36 = vmul.f32 0.5, %v2701_v6 }
 0x122   : > { %v670_v50 = vmul.f32 %v654_v15, %v3193_v49  ;;  %2714 = vtanh.f32 %v1289_v45  ;;  %v687_v24 = vmul.f32 0.90909094, %v671_v46  ;;  %v1343_v28 = vmul.f32 %v3147_v43, %v1327_v44 }
 0x123   : > { %v1344_v61 = vmul.f32 %v3158_v54, %v1328_v17  ;;  %2716 = vtanh.f32 %v1290_v18  ;;  %v1371_v26 = vpack.c.bf16 %v1356_v20, %v1355_v51  ;;  %v1315_v62 = vmul.f32 0.5, %v2703_v48 }
 0x124   : > { %v686_v22 = vmul.f32 0.90909094, %v670_v50  ;;  %v1316_v30 = vmul.f32 0.5, %v2705_v52  ;;  %v2707_v47 = vpop.eup %2706  ;;  %v696_v56 = vpack.c.bf16 %v688_v53, %v687_v24  ;;  %v1357_v42 = vmul.f32 0.90909094, %v1341_v55  ;;  %v2616_v24 = vld [vmem:[%s3814_s5 + $0x8] sm:$0xff]  }
 0x125   : > { %v1329_v63 = vadd.f32 0.5, %v1313_v58  ;;  %v1330_v5 = vadd.f32 0.5, %v1314_v36  ;;  %v1358_v8 = vmul.f32 0.90909094, %v1342_v57  ;;  %v1359_v41 = vmul.f32 0.90909094, %v1343_v28  ;;  %2594 = vmatprep.subr.msk.bf16.mxu0 %vm465_vm0, %v2616_v24 }
 0x126   : > { %v695_v49 = vpack.c.bf16 %v686_v22, %v685_v4  ;;  %v2709_v37 = vpop.eup %2708  ;;  %v1360_v43 = vmul.f32 0.90909094, %v1344_v61  ;;  %v1331_v54 = vadd.f32 0.5, %v1315_v62  ;;  %v1332_v10 = vadd.f32 0.5, %v1316_v30  ;;  %v3293_v61 = vld [vmem:[%s3812_s3 + $0x8] sm:$0xff]  }
 0x127   : > { %v1345_v16 = vmul.f32 %v3170_v32, %v1329_v63  ;;  %v1346_v9 = vmul.f32 %v3189_v39, %v1330_v5  ;;  %v1372_v3 = vpack.c.bf16 %v1358_v8, %v1357_v42  ;;  %v1317_v19 = vmul.f32 0.5, %v2707_v47 }
 0x128   : > { %2506 = vmatprep.mubr.msk.bf16.mxu1 %vm465_vm0, %v695_v49  ;;  %v2711_v27 = vpop.eup %2710  ;;  %v1373_v60 = vpack.c.bf16 %v1360_v43, %v1359_v41  ;;  %v1318_v14 = vmul.f32 0.5, %v2709_v37  ;;  %v1347_v25 = vmul.f32 %v3203_v59, %v1331_v54  ;;  %v1348_v29 = vmul.f32 %v3208_v0, %v1332_v10  ;;  %v3300_v49 = vld [vmem:[%s3813_s4] ss:$0 sm:$0xff] }
 0x129   : > { %2507 = vmatmul.mubr.msk.bf16.gmra.mxu1 %vm465_vm0, %v696_v56  ;;  %v2713_v2 = vpop.eup %2712  ;;  %v1319_v6 = vmul.f32 0.5, %v2711_v27  ;;  %v1361_v12 = vmul.f32 0.90909094, %v1345_v16  ;;  %v1362_v7 = vmul.f32 0.90909094, %v1346_v9  ;;  %v1333_v38 = vadd.f32 0.5, %v1317_v19 }
 0x12a   : > { %2534 = vmatprep.mubr.msk.bf16.mxu1 %vm465_vm0, %v1371_v26  ;;  %v1320_v31 = vmul.f32 0.5, %v2713_v2  ;;  %v1334_v15 = vadd.f32 0.5, %v1318_v14  ;;  %v1363_v39 = vmul.f32 0.90909094, %v1347_v25  ;;  %v1364_v44 = vmul.f32 0.90909094, %v1348_v29 }
 0x12b   : > { %v1335_v45 = vadd.f32 0.5, %v1319_v6  ;;  %v1374_v34 = vpack.c.bf16 %v1362_v7, %v1361_v12  ;;  %v1349_v59 = vmul.f32 %v3218_v33, %v1333_v38 }
 0x12c   : > { %v1336_v46 = vadd.f32 0.5, %v1320_v31  ;;  %v1350_v0 = vmul.f32 %v3222_v13, %v1334_v15  ;;  %v1375_v48 = vpack.c.bf16 %v1364_v44, %v1363_v39 }
 0x12d   : > { %v1351_v50 = vmul.f32 %v3226_v40, %v1335_v45  ;;  %v1365_v20 = vmul.f32 0.90909094, %v1349_v59 }
 0x12e   : > { %v1352_v51 = vmul.f32 %v3231_v21, %v1336_v46  ;;  %v1366_v52 = vmul.f32 0.90909094, %v1350_v0 }
 0x12f   : > { %v2715_v35 = vpop.eup %2714  ;;  %v1367_v57 = vmul.f32 0.90909094, %v1351_v50 }
 0x130   : > { %v2717_v32 = vpop.eup %2716  ;;  %v1321_v17 = vmul.f32 0.5, %v2715_v35  ;;  %v1368_v58 = vmul.f32 0.90909094, %v1352_v51  ;;  %v1376_v33 = vpack.c.bf16 %v1366_v52, %v1365_v20 }
 0x131   : > { %2535 = vmatmul.mubr.msk.bf16.vlgmr.msra.gmra.mxu1 %vm465_vm0, %v1372_v3  ;;  %v1322_v18 = vmul.f32 0.5, %v2717_v32 }
 0x132   : > { %2538 = vmatprep.mubr.msk.bf16.mxu1 %vm465_vm0, %v1373_v60  ;;  %v1337_v53 = vadd.f32 0.5, %v1321_v17  ;;  %v1377_v22 = vpack.c.bf16 %v1368_v58, %v1367_v57 }
 0x133   : > { %v1338_v55 = vadd.f32 0.5, %v1322_v18 }
 0x134   : > { %v1353_v13 = vmul.f32 %v3242_v23, %v1337_v53  ;;  %v998_v23 = vsel %vm465_vm0, %v2616_v24, 0 }
 0x135   : > { %v1354_v4 = vmul.f32 %v3246_v11, %v1338_v55  ;;  %2511 = vmatpush3.bf16.xpose.msra.mxu0 %v998_v23  ;;  %v2617_v11 = vld [vmem:[%s3814_s5] sm:$0xff]  }
 0x136   : > { %v1369_v40 = vmul.f32 0.90909094, %v1353_v13  ;;  %2595 = vmatprep.subr.msk.bf16.mxu0 %vm465_vm0, %v2617_v11  ;;  %v995_v28 = vsel %vm465_vm0, %v2617_v11, 0 }
 0x137   : > { %v1370_v21 = vmul.f32 0.90909094, %v1354_v4 }
 0x139   : > { %2539 = vmatmul.mubr.msk.bf16.gmra.mxu1 %vm465_vm0, %v1374_v34  ;;  %v1378_v36 = vpack.c.bf16 %v1370_v21, %v1369_v40 }
 0x13a   : > { %2542 = vmatprep.mubr.msk.bf16.mxu1 %vm465_vm0, %v1375_v48 }
 0x13d   : > { %2513 = vmatpush3.bf16.xpose.msra.mxu0 %v995_v28 }
 0x13e   : > { %2598 = vmatprep.subr.msk.bf16.mxu0 %vm465_vm0, %v3293_v61 }
 0x141   : > { %2543 = vmatmul.mubr.msk.bf16.gmra.mxu1 %vm465_vm0, %v1376_v33 }
 0x142   : > { %2546 = vmatprep.mubr.msk.bf16.mxu1 %vm465_vm0, %v1377_v22 }
 0x149   : > { %2547 = vmatmul.mubr.msk.bf16.gmra.mxu1 %vm465_vm0, %v1378_v36 }
 0x1d0   : > { %v2496_v26 = vpop.f32.mrf.mxu1 }
 0x1d1   : > { %v791_v62 = vadd.f32 %v2496_v26, %v3300_v49 }
 0x1d2   : > { %v782_v30 = vpop.f32.mrf.mxu1 }
 0x1d3   : > { %v847_v47 = vmul.f32 0.5, %v791_v62  ;;  %v783_v56 = vadd.f32 %v3300_v49, %v782_v30  ;;  %v1680_v30 = vsel %vm465_vm0, %v3293_v61, 0 }
 0x1d4   : > { %v2497_v37 = vpop.f32.mrf.mxu1 }
 0x1d5   : > { %2718 = vtanh.f32 %v847_v47  ;;  %v845_v42 = vmul.f32 0.5, %v783_v56  ;;  %v794_v63 = vadd.f32 %v2497_v37, %v3300_v49 }
 0x1d6   : > { %v785_v5 = vpop.f32.mrf.mxu1 }
 0x1d7   : > { %2720 = vtanh.f32 %v845_v42  ;;  %v848_v8 = vmul.f32 0.5, %v794_v63  ;;  %v786_v41 = vadd.f32 %v3300_v49, %v785_v5 }
 0x1d8   : > { %v2500_v43 = vpop.f32.mrf.mxu1 }
 0x1d9   : > { %2722 = vtanh.f32 %v848_v8  ;;  %v846_v27 = vmul.f32 0.5, %v786_v41  ;;  %v3307_v54 = vadd.f32 %v2500_v43, %v3300_v49 }
 0x1da   : > { %v798_v10 = vpop.f32.mrf.mxu1 }
 0x1db   : > { %2724 = vtanh.f32 %v846_v27  ;;  %v851_v2 = vmul.f32 0.5, %v3307_v54  ;;  %v3311_v16 = vadd.f32 %v3300_v49, %v798_v10 }
 0x1dc   : > { %v2501_v9 = vpop.f32.mrf.mxu1 }
 0x1dd   : > { %2726 = vtanh.f32 %v851_v2  ;;  %v849_v3 = vmul.f32 0.5, %v3311_v16  ;;  %v3315_v60 = vadd.f32 %v2501_v9, %v3300_v49 }
 0x1de   : > { %v801_v19 = vpop.f32.mrf.mxu1 }
 0x1df   : > { %2728 = vtanh.f32 %v849_v3  ;;  %v852_v14 = vmul.f32 0.5, %v3315_v60  ;;  %v3319_v25 = vadd.f32 %v3300_v49, %v801_v19 }
 0x1e0   : > { %v2504_v6 = vpop.f32.mrf.mxu1 }
 0x1e1   : > { %2730 = vtanh.f32 %v852_v14  ;;  %v850_v29 = vmul.f32 0.5, %v3319_v25  ;;  %v3323_v12 = vadd.f32 %v2504_v6, %v3300_v49 }
 0x1e2   : > { %v2719_v31 = vpop.eup %2718  ;;  %v814_v35 = vpop.f32.mrf.mxu1 }
 0x1e3   : > { %v879_v7 = vmul.f32 0.5, %v2719_v31  ;;  %2732 = vtanh.f32 %v850_v29  ;;  %v855_v15 = vmul.f32 0.5, %v3323_v12  ;;  %v3327_v32 = vadd.f32 %v3300_v49, %v814_v35  ;;  %v2619_v35 = vld [vmem:[%s3812_s3] sm:$0xff]  }
 0x1e4   : > { %v2721_v38 = vpop.eup %2720  ;;  %v2505_v44 = vpop.f32.mrf.mxu1 }
 0x1e5   : > { %v877_v39 = vmul.f32 0.5, %v2721_v38  ;;  %v895_v46 = vadd.f32 0.5, %v879_v7  ;;  %2734 = vtanh.f32 %v855_v15  ;;  %v853_v34 = vmul.f32 0.5, %v3327_v32 }
 0x1e6   : > { %v2723_v45 = vpop.eup %2722  ;;  %v3331_v59 = vadd.f32 %v2505_v44, %v3300_v49  ;;  %v817_v18 = vpop.f32.mrf.mxu1 }
 0x1e7   : > { %v893_v0 = vadd.f32 0.5, %v877_v39  ;;  %v880_v17 = vmul.f32 0.5, %v2723_v45  ;;  %2736 = vtanh.f32 %v853_v34  ;;  %v3335_v51 = vadd.f32 %v3300_v49, %v817_v18 }
 0x1e8   : > { %v2725_v48 = vpop.eup %2724  ;;  %v856_v50 = vmul.f32 0.5, %v3331_v59  ;;  %v911_v57 = vmul.f32 %v895_v46, %v791_v62 }
 0x1e9   : > { %v896_v20 = vadd.f32 0.5, %v880_v17  ;;  %v878_v52 = vmul.f32 0.5, %v2725_v48  ;;  %v2508_v53 = vpop.f32.mrf.mxu1  ;;  %v854_v58 = vmul.f32 0.5, %v3335_v51  ;;  %v909_v13 = vmul.f32 %v893_v0, %v783_v56 }
 0x1ea   : > { %v2727_v55 = vpop.eup %2726  ;;  %2738 = vtanh.f32 %v856_v50  ;;  %v3339_v33 = vadd.f32 %v2508_v53, %v3300_v49  ;;  %v927_v56 = vmul.f32 0.90909094, %v911_v57 }
 0x1eb   : > { %v912_v4 = vmul.f32 %v896_v20, %v794_v63  ;;  %v894_v22 = vadd.f32 0.5, %v878_v52  ;;  %v883_v40 = vmul.f32 0.5, %v2727_v55  ;;  %v830_v21 = vpop.f32.mrf.mxu1  ;;  %2740 = vtanh.f32 %v854_v58 }
 0x1ec   : > { %v2729_v36 = vpop.eup %2728  ;;  %v859_v24 = vmul.f32 0.5, %v3339_v33  ;;  %v3343_v23 = vadd.f32 %v3300_v49, %v830_v21  ;;  %v925_v63 = vmul.f32 0.90909094, %v909_v13 }
 0x1ed   : > { %v928_v11 = vmul.f32 0.90909094, %v912_v4  ;;  %v910_v28 = vmul.f32 %v894_v22, %v786_v41  ;;  %v881_v26 = vmul.f32 0.5, %v2729_v36  ;;  %v2509_v62 = vpop.f32.mrf.mxu1  ;;  %v899_v8 = vadd.f32 0.5, %v883_v40 }
 0x1ee   : > { %v2731_v47 = vpop.eup %2730  ;;  %2742 = vtanh.f32 %v859_v24  ;;  %v857_v37 = vmul.f32 0.5, %v3343_v23  ;;  %v3349_v42 = vadd.f32 %v2509_v62, %v3300_v49 }
 0x1ef   : > { %v926_v5 = vmul.f32 0.90909094, %v910_v28  ;;  %v897_v43 = vadd.f32 0.5, %v881_v26  ;;  %v833_v27 = vpop.f32.mrf.mxu1  ;;  %v884_v41 = vmul.f32 0.5, %v2731_v47  ;;  %v942_v9 = vpack.c.bf16 %v928_v11, %v927_v56 }
 0x1f0   : > { %v2733_v10 = vpop.eup %2732  ;;  %2744 = vtanh.f32 %v857_v37  ;;  %v860_v2 = vmul.f32 0.5, %v3349_v42  ;;  %v3353_v61 = vadd.f32 %v3300_v49, %v833_v27  ;;  %v915_v15 = vmul.f32 %v899_v8, %v3307_v54 }
 0x1f1   : > { %v941_v3 = vpack.c.bf16 %v926_v5, %v925_v63  ;;  %v913_v19 = vmul.f32 %v897_v43, %v3311_v16  ;;  %v882_v14 = vmul.f32 0.5, %v2733_v10  ;;  %v2536_v29 = vpop.f32.mrf.mxu1  ;;  %v900_v6 = vadd.f32 0.5, %v884_v41 }
 0x1f2   : > { %2746 = vtanh.f32 %v860_v2  ;;  %v858_v31 = vmul.f32 0.5, %v3353_v61  ;;  %v3358_v7 = vadd.f32 %v2536_v29, %v3095_v1  ;;  %v2735_v38 = vpop.eup %2734  ;;  %v931_v57 = vmul.f32 0.90909094, %v915_v15 }
 0x1f3   : > { %v898_v39 = vadd.f32 0.5, %v882_v14  ;;  %v1464_v44 = vpop.f32.mrf.mxu1  ;;  %2514 = vmatprep.mubr.msk.bf16.mxu0 %vm465_vm0, %v941_v3  ;;  %v916_v16 = vmul.f32 %v900_v6, %v3315_v60  ;;  %v887_v45 = vmul.f32 0.5, %v2735_v38  ;;  %v929_v54 = vmul.f32 0.90909094, %v913_v19 }
 0x1f4   : > { %2748 = vtanh.f32 %v858_v31  ;;  %v1529_v46 = vmul.f32 0.5, %v3358_v7  ;;  %2515 = vmatmul.mubr.msk.bf16.vlgmr.msra.gmra.mxu0 %vm465_vm0, %v942_v9  ;;  %v2737_v34 = vpop.eup %2736  ;;  %v3370_v17 = vadd.f32 %v3095_v1, %v1464_v44  ;;  %v1677_v26 = vsel %vm465_vm0, %v2619_v35, 0 }
 0x1f5   : > { %v914_v0 = vmul.f32 %v898_v39, %v3319_v25  ;;  %v2537_v18 = vpop.f32.mrf.mxu1  ;;  %2551 = vmatpush3.bf16.xpose.msra.mxu0 %v1680_v30  ;;  %v932_v48 = vmul.f32 0.90909094, %v916_v16  ;;  %v885_v50 = vmul.f32 0.5, %v2737_v34  ;;  %v903_v52 = vadd.f32 0.5, %v887_v45 }
 0x1f6   : > { %2750 = vtanh.f32 %v1529_v46  ;;  %2599 = vmatprep.subr.msk.bf16.mxu0 %vm465_vm0, %v2619_v35  ;;  %v1527_v53 = vmul.f32 0.5, %v3370_v17  ;;  %v3375_v55 = vadd.f32 %v2537_v18, %v3095_v1 }
 0x1f7   : > { %v2739_v60 = vpop.eup %2738  ;;  %v930_v20 = vmul.f32 0.90909094, %v914_v0  ;;  %v1467_v25 = vpop.f32.mrf.mxu1  ;;  %v901_v58 = vadd.f32 0.5, %v885_v50  ;;  %v944_v24 = vpack.c.bf16 %v932_v48, %v931_v57  ;;  %v919_v30 = vmul.f32 %v903_v52, %v3323_v12 }
 0x1f8   : > { %v888_v13 = vmul.f32 0.5, %v2739_v60  ;;  %v2741_v4 = vpop.eup %2740  ;;  %2752 = vtanh.f32 %v1527_v53  ;;  %v1530_v40 = vmul.f32 0.5, %v3375_v55  ;;  %v3379_v21 = vadd.f32 %v3095_v1, %v1467_v25 }
 0x1f9   : > { %v943_v22 = vpack.c.bf16 %v930_v20, %v929_v54  ;;  %v2540_v36 = vpop.f32.mrf.mxu1  ;;  %v886_v28 = vmul.f32 0.5, %v2741_v4  ;;  %v917_v63 = vmul.f32 %v901_v58, %v3327_v32  ;;  %v935_v19 = vmul.f32 0.90909094, %v919_v30 }
 0x1fa   : > { %v904_v11 = vadd.f32 0.5, %v888_v13  ;;  %2754 = vtanh.f32 %v1530_v40  ;;  %v1528_v47 = vmul.f32 0.5, %v3379_v21  ;;  %v3385_v56 = vadd.f32 %v2540_v36, %v3095_v1 }
 0x1fb   : > { %v2743_v62 = vpop.eup %2742  ;;  %v1480_v37 = vpop.f32.mrf.mxu1  ;;  %2518 = vmatprep.mubr.msk.bf16.mxu0 %vm465_vm0, %v943_v22  ;;  %v902_v8 = vadd.f32 0.5, %v886_v28  ;;  %v933_v6 = vmul.f32 0.90909094, %v917_v63 }
 0x1fc   : > { %v920_v5 = vmul.f32 %v904_v11, %v3331_v59  ;;  %v891_v43 = vmul.f32 0.5, %v2743_v62  ;;  %2519 = vmatmul.mubr.msk.bf16.gmra.mxu0 %vm465_vm0, %v944_v24  ;;  %2756 = vtanh.f32 %v1528_v47  ;;  %v1533_v12 = vmul.f32 0.5, %v3385_v56 }
 0x1fd   : > { %v2745_v27 = vpop.eup %2744  ;;  %v3393_v10 = vadd.f32 %v3095_v1, %v1480_v37  ;;  %v2541_v41 = vpop.f32.mrf.mxu1  ;;  %2553 = vmatpush3.bf16.xpose.msra.mxu0 %v1677_v26  ;;  %v918_v9 = vmul.f32 %v902_v8, %v3335_v51 }
 0x1fe   : > { %v936_v2 = vmul.f32 0.90909094, %v920_v5  ;;  %v889_v3 = vmul.f32 0.5, %v2745_v27  ;;  %2758 = vtanh.f32 %v1533_v12  ;;  %v3398_v14 = vadd.f32 %v2541_v41, %v3095_v1 }
 0x1ff   : > { %v2747_v32 = vpop.eup %2746  ;;  %v1531_v59 = vmul.f32 0.5, %v3393_v10  ;;  %v1483_v29 = vpop.f32.mrf.mxu1  ;;  %v934_v31 = vmul.f32 0.90909094, %v918_v9  ;;  %v907_v35 = vadd.f32 0.5, %v891_v43 }
 0x200   : > { %v905_v38 = vadd.f32 0.5, %v889_v3  ;;  %v892_v39 = vmul.f32 0.5, %v2747_v32  ;;  %v1534_v44 = vmul.f32 0.5, %v3398_v14  ;;  %v3402_v51 = vadd.f32 %v3095_v1, %v1483_v29 }
 0x201   : > { %v2749_v15 = vpop.eup %2748  ;;  %2760 = vtanh.f32 %v1531_v59  ;;  %v2544_v16 = vpop.f32.mrf.mxu1  ;;  %v946_v45 = vpack.c.bf16 %v936_v2, %v935_v19  ;;  %v945_v46 = vpack.c.bf16 %v934_v31, %v933_v6  ;;  %v923_v25 = vmul.f32 %v907_v35, %v3339_v33 }
 0x202   : > { %v890_v34 = vmul.f32 0.5, %v2749_v15  ;;  %v908_v18 = vadd.f32 0.5, %v892_v39  ;;  %2762 = vtanh.f32 %v1534_v44  ;;  %v1532_v54 = vmul.f32 0.5, %v3402_v51 }
 0x203   : > { %v2751_v0 = vpop.eup %2750  ;;  %v3406_v48 = vadd.f32 %v2544_v16, %v3095_v1  ;;  %v1496_v50 = vpop.f32.mrf.mxu1  ;;  %v921_v60 = vmul.f32 %v905_v38, %v3343_v23  ;;  %2522 = vmatprep.mubr.msk.bf16.mxu0 %vm465_vm0, %v945_v46 }
 0x204   : > { %v906_v20 = vadd.f32 0.5, %v890_v34  ;;  %v1561_v52 = vmul.f32 0.5, %v2751_v0  ;;  %v3410_v53 = vadd.f32 %v3095_v1, %v1496_v50  ;;  %v924_v57 = vmul.f32 %v908_v18, %v3349_v42  ;;  %2523 = vmatmul.mubr.msk.bf16.gmra.mxu0 %vm465_vm0, %v946_v45  ;;  %v2878_v1 = vld [vmem:[%s3811_s2] ss:$0 sm:$0xff] }
 0x205   : > { %2764 = vtanh.f32 %v1532_v54  ;;  %v1537_v58 = vmul.f32 0.5, %v3406_v48  ;;  %v2545_v13 = vpop.f32.mrf.mxu1  ;;  %v2753_v4 = vpop.eup %2752  ;;  %v937_v28 = vmul.f32 0.90909094, %v921_v60 }
 0x206   : > { %v922_v23 = vmul.f32 %v906_v20, %v3353_v61  ;;  %v1577_v22 = vadd.f32 0.5, %v1561_v52  ;;  %v1535_v40 = vmul.f32 0.5, %v3410_v53  ;;  %v3422_v36 = vadd.f32 %v2878_v1, %v2545_v13 }
 0x207   : > { %v940_v33 = vmul.f32 0.90909094, %v924_v57  ;;  %v1559_v42 = vmul.f32 0.5, %v2753_v4  ;;  %2766 = vtanh.f32 %v1537_v58  ;;  %v1499_v24 = vpop.f32.mrf.mxu1  ;;  %v2755_v11 = vpop.eup %2754  ;;  %v939_v61 = vmul.f32 0.90909094, %v923_v25 }
 0x208   : > { %v938_v26 = vmul.f32 0.90909094, %v922_v23  ;;  %2768 = vtanh.f32 %v1535_v40  ;;  %v1538_v62 = vmul.f32 0.5, %v3422_v36  ;;  %v1562_v47 = vmul.f32 0.5, %v2755_v11 }
 0x209   : > { %v1575_v30 = vadd.f32 0.5, %v1559_v42  ;;  %v3425_v37 = vadd.f32 %v2878_v1, %v1499_v24  ;;  %v2548_v63 = vpop.f32.mrf.mxu1  ;;  %v2757_v5 = vpop.eup %2756  ;;  %v1593_v43 = vmul.f32 %v1577_v22, %v3358_v7  ;;  %v948_v12 = vpack.c.bf16 %v940_v33, %v939_v61 }
 0x20a   : > { %v947_v8 = vpack.c.bf16 %v938_v26, %v937_v28  ;;  %2770 = vtanh.f32 %v1538_v62  ;;  %v3428_v27 = vadd.f32 %v2878_v1, %v2548_v63  ;;  %v1578_v41 = vadd.f32 0.5, %v1562_v47 }
 0x20b   : > { %v1560_v2 = vmul.f32 0.5, %v2757_v5  ;;  %v1536_v9 = vmul.f32 0.5, %v3425_v37  ;;  %v1512_v3 = vpop.f32.mrf.mxu1  ;;  %v2759_v32 = vpop.eup %2758  ;;  %v1591_v29 = vmul.f32 %v1575_v30, %v3370_v17  ;;  %v1609_v44 = vmul.f32 0.90909094, %v1593_v43 }
 0x20c   : > { %v1541_v19 = vmul.f32 0.5, %v3428_v27  ;;  %v3432_v59 = vadd.f32 %v2878_v1, %v1512_v3  ;;  %2526 = vmatprep.mubr.msk.bf16.mxu0 %vm465_vm0, %v947_v8  ;;  %v1594_v7 = vmul.f32 %v1578_v41, %v3375_v55  ;;  %v1565_v38 = vmul.f32 0.5, %v2759_v32 }
 0x20d   : > { %v1576_v6 = vadd.f32 0.5, %v1560_v2  ;;  %2527 = vmatmul.mubr.msk.bf16.gmra.mxu0 %vm465_vm0, %v948_v12  ;;  %v2549_v31 = vpop.f32.mrf.mxu1  ;;  %2772 = vtanh.f32 %v1536_v9  ;;  %v1607_v18 = vmul.f32 0.90909094, %v1591_v29 }
 0x20e   : > { %v2761_v35 = vpop.eup %2760  ;;  %v1539_v15 = vmul.f32 0.5, %v3432_v59  ;;  %v3439_v39 = vadd.f32 %v2878_v1, %v2549_v31  ;;  %v1610_v17 = vmul.f32 0.90909094, %v1594_v7  ;;  %2774 = vtanh.f32 %v1541_v19 }
 0x20f   : > { %v1592_v16 = vmul.f32 %v1576_v6, %v3379_v21  ;;  %v1563_v45 = vmul.f32 0.5, %v2761_v35  ;;  %v1515_v46 = vpop.f32.mrf.mxu1  ;;  %v2763_v34 = vpop.eup %2762  ;;  %v1581_v20 = vadd.f32 0.5, %v1565_v38 }
 0x210   : > { %v1542_v55 = vmul.f32 0.5, %v3439_v39  ;;  %v3443_v0 = vadd.f32 %v2878_v1, %v1515_v46  ;;  %v1566_v52 = vmul.f32 0.5, %v2763_v34  ;;  %2776 = vtanh.f32 %v1539_v15 }
 0x211   : > { %v1608_v54 = vmul.f32 0.90909094, %v1592_v16  ;;  %v1579_v50 = vadd.f32 0.5, %v1563_v45  ;;  %v1624_v13 = vpack.c.bf16 %v1610_v17, %v1609_v44  ;;  %v1597_v1 = vmul.f32 %v1581_v20, %v3385_v56 }
 0x212   : > { %v2765_v60 = vpop.eup %2764  ;;  %v1540_v25 = vmul.f32 0.5, %v3443_v0  ;;  %v1582_v4 = vadd.f32 0.5, %v1566_v52  ;;  %2778 = vtanh.f32 %v1542_v55 }
 0x213   : > { %v1623_v57 = vpack.c.bf16 %v1608_v54, %v1607_v18  ;;  %v1564_v21 = vmul.f32 0.5, %v2765_v60  ;;  %v1595_v22 = vmul.f32 %v1579_v50, %v3393_v10  ;;  %v1613_v10 = vmul.f32 0.90909094, %v1597_v1 }
 0x214   : > { %v2767_v58 = vpop.eup %2766  ;;  %2780 = vtanh.f32 %v1540_v25  ;;  %v1598_v33 = vmul.f32 %v1582_v4, %v3398_v14  ;;  %v2879_v4 = vld [vmem:[%s2988_s15 + $0x10] sm:$0xff] }
 0x215   : > { %v2769_v23 = vpop.eup %2768  ;;  %v1580_v40 = vadd.f32 0.5, %v1564_v21  ;;  %2554 = vmatprep.mubr.msk.bf16.mxu0 %vm465_vm0, %v1623_v57  ;;  %v1569_v28 = vmul.f32 0.5, %v2767_v58  ;;  %v1611_v61 = vmul.f32 0.90909094, %v1595_v22  ;;  %v3479_v57 = vld [vmem:[%s3815_s6] ss:$0 sm:$0xff] }
 0x216   : > { %v1567_v42 = vmul.f32 0.5, %v2769_v23  ;;  %2555 = vmatmul.mubr.msk.bf16.vlgmr.msra.gmra.mxu0 %vm465_vm0, %v1624_v13  ;;  %v1614_v26 = vmul.f32 0.90909094, %v1598_v33 }
 0x217   : > { %v2771_v24 = vpop.eup %2770  ;;  %v1596_v11 = vmul.f32 %v1580_v40, %v3402_v51  ;;  %v1585_v43 = vadd.f32 0.5, %v1569_v28 }
 0x218   : > { %v1570_v62 = vmul.f32 0.5, %v2771_v24  ;;  %v1583_v47 = vadd.f32 0.5, %v1567_v42  ;;  %v1626_v56 = vpack.c.bf16 %v1614_v26, %v1613_v10  ;;  %v2880_v42 = vld [vmem:[%s2988_s15] sm:$0xff] }
 0x219   : > { %v1612_v30 = vmul.f32 0.90909094, %v1596_v11  ;;  %v1601_v3 = vmul.f32 %v1585_v43, %v3406_v48  ;;  %v2882_v43 = vld [vmem:[%s2988_s15 + $0x8] sm:$0xff] }
 0x21a   : > { %v1586_v63 = vadd.f32 0.5, %v1570_v62  ;;  %v2773_v5 = vpop.eup %2772  ;;  %v1599_v51 = vmul.f32 %v1583_v47, %v3410_v53 }
 0x21b   : > { %v1625_v8 = vpack.c.bf16 %v1612_v30, %v1611_v61  ;;  %v1568_v12 = vmul.f32 0.5, %v2773_v5  ;;  %v2775_v14 = vpop.eup %2774  ;;  %v1617_v44 = vmul.f32 0.90909094, %v1601_v3  ;;  %v2881_v61 = vld [vmem:[%s2988_s15 + $0x18] sm:$0xff] }
 0x21c   : > { %v1602_v41 = vmul.f32 %v1586_v63, %v3422_v36  ;;  %v1573_v32 = vmul.f32 0.5, %v2775_v14  ;;  %v1615_v35 = vmul.f32 0.90909094, %v1599_v51 }
 0x21d   : > { %2558 = vmatprep.mubr.msk.bf16.mxu0 %vm465_vm0, %v1625_v8  ;;  %v1584_v2 = vadd.f32 0.5, %v1568_v12  ;;  %v2777_v9 = vpop.eup %2776 }
 0x21e   : > { %2559 = vmatmul.mubr.msk.bf16.gmra.mxu0 %vm465_vm0, %v1626_v56  ;;  %v1571_v29 = vmul.f32 0.5, %v2777_v9  ;;  %v1618_v6 = vmul.f32 0.90909094, %v1602_v41  ;;  %v1589_v16 = vadd.f32 0.5, %v1573_v32  ;;  %v2883_v41 = vld [vmem:[%s2988_s15 + $0x30] sm:$0xff] }
 0x21f   : > { %v1600_v19 = vmul.f32 %v1584_v2, %v3425_v37  ;;  %v2779_v7 = vpop.eup %2778 }
 0x220   : > { %v1587_v36 = vadd.f32 0.5, %v1571_v29  ;;  %v1574_v15 = vmul.f32 0.5, %v2779_v7  ;;  %v1628_v34 = vpack.c.bf16 %v1618_v6, %v1617_v44  ;;  %v1605_v37 = vmul.f32 %v1589_v16, %v3428_v27  ;;  %v2620_v27 = vld [vmem:[%s3814_s5 + $0x8] sm:$0xff]   ;;  %v2884_v29 = vld [vmem:[%s2988_s15 + $0x20] sm:$0xff] }
 0x221   : > { %v2781_v31 = vpop.eup %2780  ;;  %v1616_v38 = vmul.f32 0.90909094, %v1600_v19  ;;  %2600 = vmatprep.subr.msk.bf16.mxu1 %vm465_vm0, %v2620_v27 }
 0x222   : > { %v1572_v53 = vmul.f32 0.5, %v2781_v31  ;;  %v1590_v46 = vadd.f32 0.5, %v1574_v15  ;;  %v1603_v17 = vmul.f32 %v1587_v36, %v3432_v59  ;;  %v1621_v20 = vmul.f32 0.90909094, %v1605_v37  ;;  %v2885_v36 = vld [vmem:[%s2988_s15 + $0x38] sm:$0xff] }
 0x223   : > { %v1627_v45 = vpack.c.bf16 %v1616_v38, %v1615_v35  ;;  %v1932_v59 = vsel %vm465_vm0, %v2620_v27, 0 }
 0x224   : > { %v1588_v48 = vadd.f32 0.5, %v1572_v53  ;;  %v1606_v55 = vmul.f32 %v1590_v46, %v3439_v39  ;;  %v1619_v54 = vmul.f32 0.90909094, %v1603_v17  ;;  %2571 = vmatpush3.bf16.xpose.msra.mxu1 %v1932_v59  ;;  %v2621_v39 = vld [vmem:[%s3814_s5] sm:$0xff]   ;;  %v2886_v46 = vld [vmem:[%s2988_s15 + $0x28] sm:$0xff] }
 0x225   : > { %2562 = vmatprep.mubr.msk.bf16.mxu0 %vm465_vm0, %v1627_v45  ;;  %2601 = vmatprep.subr.msk.bf16.mxu1 %vm465_vm0, %v2621_v39 }
 0x226   : > { %v1604_v18 = vmul.f32 %v1588_v48, %v3443_v0  ;;  %2563 = vmatmul.mubr.msk.bf16.gmra.mxu0 %vm465_vm0, %v1628_v34  ;;  %v1622_v50 = vmul.f32 0.90909094, %v1606_v55  ;;  %v1929_v0 = vsel %vm465_vm0, %v2621_v39, 0  ;;  %v2888_v39 = vld [vmem:[%s2988_s15 + $0x40] sm:$0xff] }
 0x228   : > { %v1620_v60 = vmul.f32 0.90909094, %v1604_v18  ;;  %v1630_v25 = vpack.c.bf16 %v1622_v50, %v1621_v20 }
 0x22a   : > { %v1629_v52 = vpack.c.bf16 %v1620_v60, %v1619_v54  ;;  %v2887_v54 = vld [vmem:[%s2988_s15 + $0x50] sm:$0xff] }
 0x22c   : > { %2566 = vmatprep.mubr.msk.bf16.mxu0 %vm465_vm0, %v1629_v52  ;;  %2573 = vmatpush3.bf16.xpose.msra.mxu1 %v1929_v0 }
 0x22e   : > { %2567 = vmatmul.mubr.msk.bf16.gmra.mxu0 %vm465_vm0, %v1630_v25 }
 0x2b4   : > { %v2516_v21 = vpop.f32.mrf.mxu0 }
 0x2b5   : > { %v1043_v58 = vadd.f32 %v2516_v21, %v3479_v57 }
 0x2b6   : > { %v1034_v13 = vpop.f32.mrf.mxu0 }
 0x2b7   : > { %v1099_v23 = vadd.f32 %v2879_v4, %v1043_v58  ;;  %v1131_v22 = vadd.f32 1.0, %v1043_v58  ;;  %v1035_v40 = vadd.f32 %v3479_v57, %v1034_v13 }
 0x2b8   : > { %v2517_v1 = vpop.f32.mrf.mxu0 }
 0x2b9   : > { %1115 = vst.msk [vmem:[%s3486_s28 + $0x10] sm:$0xff] %vm465_vm0, %v1099_v23  ;;  %v1147_v33 = vand.u32 2147483647, %v1131_v22  ;;  %v1097_v24 = vadd.f32 %v2880_v42, %v1035_v40  ;;  %v1129_v11 = vadd.f32 1.0, %v1035_v40  ;;  %v1046_v28 = vadd.f32 %v2517_v1, %v3479_v57 }
 0x2ba   : > { %v1037_v26 = vpop.f32.mrf.mxu0 }
 0x2bb   : > { %2782 = vlog2.f32 %v1147_v33  ;;  %1113 = vst.msk [vmem:[%s3486_s28] sm:$0xff] %vm465_vm0, %v1097_v24  ;;  %v1145_v62 = vand.u32 2147483647, %v1129_v11  ;;  %v1100_v30 = vadd.f32 %v2881_v61, %v1046_v28  ;;  %v1132_v10 = vadd.f32 1.0, %v1046_v28  ;;  %v2889_v33 = vld [vmem:[%s2988_s15 + $0x58] sm:$0xff] }
 0x2bc   : > { %v1038_v47 = vadd.f32 %v3479_v57, %v1037_v26  ;;  %v2520_v63 = vpop.f32.mrf.mxu0 }
 0x2bd   : > { %2784 = vlog2.f32 %v1145_v62  ;;  %1116 = vst.msk [vmem:[%s3486_s28 + $0x18] sm:$0xff] %vm465_vm0, %v1100_v30  ;;  %v1148_v5 = vand.u32 2147483647, %v1132_v10  ;;  %v1059_v8 = vadd.f32 %v2520_v63, %v3479_v57  ;;  %v2890_v62 = vld [vmem:[%s2988_s15 + $0x48] sm:$0xff] }
 0x2be   : > { %v1098_v56 = vadd.f32 %v2882_v43, %v1038_v47  ;;  %v1130_v12 = vadd.f32 1.0, %v1038_v47  ;;  %v1050_v14 = vpop.f32.mrf.mxu0 }
 0x2bf   : > { %2786 = vlog2.f32 %v1148_v5  ;;  %v1103_v51 = vadd.f32 %v2883_v41, %v1059_v8  ;;  %v1135_v2 = vadd.f32 1.0, %v1059_v8  ;;  %v1051_v9 = vadd.f32 %v3479_v57, %v1050_v14 }
 0x2c0   : > { %1114 = vst.msk [vmem:[%s3486_s28 + $0x8] sm:$0xff] %vm465_vm0, %v1098_v56  ;;  %v1146_v3 = vand.u32 2147483647, %v1130_v12  ;;  %v2521_v32 = vpop.f32.mrf.mxu0  ;;  %v2891_v12 = vld [vmem:[%s2988_s15 + $0x70] sm:$0xff] }
 0x2c1   : > { %1119 = vst.msk [vmem:[%s3486_s28 + $0x30] sm:$0xff] %vm465_vm0, %v1103_v51  ;;  %v1151_v19 = vand.u32 2147483647, %v1135_v2  ;;  %v1101_v7 = vadd.f32 %v2884_v29, %v1051_v9  ;;  %v1133_v6 = vadd.f32 1.0, %v1051_v9  ;;  %v1062_v31 = vadd.f32 %v2521_v32, %v3479_v57 }
 0x2c2   : > { %2788 = vlog2.f32 %v1146_v3  ;;  %v1053_v35 = vpop.f32.mrf.mxu0 }
 0x2c3   : > { %2790 = vlog2.f32 %v1151_v19  ;;  %1117 = vst.msk [vmem:[%s3486_s28 + $0x20] sm:$0xff] %vm465_vm0, %v1101_v7  ;;  %v1149_v38 = vand.u32 2147483647, %v1133_v6  ;;  %v1104_v15 = vadd.f32 %v2885_v36, %v1062_v31  ;;  %v1136_v44 = vadd.f32 1.0, %v1062_v31  ;;  %v2892_v19 = vld [vmem:[%s2988_s15 + $0x60] sm:$0xff] }
 0x2c4   : > { %v1054_v16 = vadd.f32 %v3479_v57, %v1053_v35  ;;  %v2524_v45 = vpop.f32.mrf.mxu0 }
 0x2c5   : > { %1120 = vst.msk [vmem:[%s3486_s28 + $0x38] sm:$0xff] %vm465_vm0, %v1104_v15  ;;  %v1152_v53 = vand.u32 2147483647, %v1136_v44  ;;  %2792 = vlog2.f32 %v1149_v38  ;;  %v1075_v48 = vadd.f32 %v2524_v45, %v3479_v57 }
 0x2c6   : > { %v1102_v34 = vadd.f32 %v2886_v46, %v1054_v16  ;;  %v1134_v17 = vadd.f32 1.0, %v1054_v16  ;;  %v1066_v55 = vpop.f32.mrf.mxu0  ;;  %v2893_v16 = vld [vmem:[%s2988_s15 + $0x78] sm:$0xff] }
 0x2c7   : > { %2794 = vlog2.f32 %v1152_v53  ;;  %v1107_v50 = vadd.f32 %v2887_v54, %v1075_v48  ;;  %v1139_v60 = vadd.f32 1.0, %v1075_v48  ;;  %v1067_v20 = vadd.f32 %v3479_v57, %v1066_v55 }
 0x2c8   : > { %v2783_v37 = vpop.eup %2782  ;;  %1118 = vst.msk [vmem:[%s3486_s28 + $0x28] sm:$0xff] %vm465_vm0, %v1102_v34  ;;  %v1150_v18 = vand.u32 2147483647, %v1134_v17  ;;  %v2525_v52 = vpop.f32.mrf.mxu0  ;;  %v2894_v34 = vld [vmem:[%s2988_s15 + $0x68] sm:$0xff] }
 0x2c9   : > { %v1166_v25 = vmul.f32 0.6931472, %v2783_v37  ;;  %1123 = vst.msk [vmem:[%s3486_s28 + $0x50] sm:$0xff] %vm465_vm0, %v1107_v50  ;;  %v1155_v59 = vand.u32 2147483647, %v1139_v60  ;;  %v1105_v0 = vadd.f32 %v2888_v39, %v1067_v20  ;;  %v1137_v21 = vadd.f32 1.0, %v1067_v20 }
 0x2ca   : > { %v2785_v27 = vpop.eup %2784  ;;  %2796 = vlog2.f32 %v1150_v18  ;;  %v1078_v58 = vadd.f32 %v2525_v52, %v3479_v57  ;;  %v1069_v13 = vpop.f32.mrf.mxu0 }
 0x2cb   : > { %v1199_v4 = vsel %vm465_vm0, %v1166_v25, 0.0  ;;  %v1162_v23 = vmul.f32 0.6931472, %v2785_v27  ;;  %2798 = vlog2.f32 %v1155_v59  ;;  %1121 = vst.msk [vmem:[%s3486_s28 + $0x40] sm:$0xff] %vm465_vm0, %v1105_v0  ;;  %v1153_v40 = vand.u32 2147483647, %v1137_v21 }
 0x2cc   : > { %v2787_v22 = vpop.eup %2786  ;;  %v1070_v1 = vadd.f32 %v3479_v57, %v1069_v13  ;;  %1200 = vadd.xlane.f32.xlu1 %v1199_v4  ;;  %v1108_v42 = vadd.f32 %v2889_v33, %v1078_v58  ;;  %v1140_v24 = vadd.f32 1.0, %v1078_v58 }
 0x2cd   : > { %v2528_v11 = vpop.f32.mrf.mxu0  ;;  %v1193_v28 = vsel %vm465_vm0, %v1162_v23, 0.0  ;;  %v1168_v26 = vmul.f32 0.6931472, %v2787_v22  ;;  %2800 = vlog2.f32 %v1153_v40 }
 0x2ce   : > { %v1106_v61 = vadd.f32 %v2890_v62, %v1070_v1  ;;  %v1138_v30 = vadd.f32 1.0, %v1070_v1  ;;  %v1091_v10 = vadd.f32 %v2528_v11, %v3479_v57  ;;  %1194 = vadd.xlane.f32.xlu0 %v1193_v28  ;;  %1124 = vst.msk [vmem:[%s3486_s28 + $0x58] sm:$0xff] %vm465_vm0, %v1108_v42  ;;  %v1156_v63 = vand.u32 2147483647, %v1140_v24 }
 0x2cf   : > { %v2789_v47 = vpop.eup %2788  ;;  %v1082_v5 = vpop.f32.mrf.mxu0  ;;  %v1202_v8 = vsel %vm465_vm0, %v1168_v26, 0.0 }
 0x2d0   : > { %v2791_v43 = vpop.eup %2790  ;;  %1122 = vst.msk [vmem:[%s3486_s28 + $0x48] sm:$0xff] %vm465_vm0, %v1106_v61  ;;  %v1154_v56 = vand.u32 2147483647, %v1138_v30  ;;  %v1111_v14 = vadd.f32 %v2891_v12, %v1091_v10  ;;  %v1143_v41 = vadd.f32 1.0, %v1091_v10  ;;  %v1083_v51 = vadd.f32 %v3479_v57, %v1082_v5  ;;  %1203 = vadd.xlane.f32.xlu1 %v1202_v8 }
 0x2d1   : > { %2802 = vlog2.f32 %v1156_v63  ;;  %v2529_v2 = vpop.f32.mrf.mxu0  ;;  %v1164_v9 = vmul.f32 0.6931472, %v2789_v47  ;;  %v1174_v3 = vmul.f32 0.6931472, %v2791_v43  ;;  %v3583_v43 = vld [vmem:[%s3813_s4] ss:$0 sm:$0xff] }
 0x2d2   : > { %2804 = vlog2.f32 %v1154_v56  ;;  %1127 = vst.msk [vmem:[%s3486_s28 + $0x70] sm:$0xff] %vm465_vm0, %v1111_v14  ;;  %v1159_v32 = vand.u32 2147483647, %v1143_v41  ;;  %v1109_v29 = vadd.f32 %v2892_v19, %v1083_v51  ;;  %v1141_v7 = vadd.f32 1.0, %v1083_v51  ;;  %v2793_v6 = vpop.eup %2792 }
 0x2d3   : > { %v1094_v31 = vadd.f32 %v2529_v2, %v3479_v57  ;;  %v1085_v35 = vpop.f32.mrf.mxu0  ;;  %v1196_v38 = vsel %vm465_vm0, %v1164_v9, 0.0  ;;  %v1211_v37 = vsel %vm465_vm0, %v1174_v3, 0.0  ;;  %v1170_v18 = vmul.f32 0.6931472, %v2793_v6 }
 0x2d4   : > { %v2795_v36 = vpop.eup %2794  ;;  %2806 = vlog2.f32 %v1159_v32  ;;  %1125 = vst.msk [vmem:[%s3486_s28 + $0x60] sm:$0xff] %vm465_vm0, %v1109_v29  ;;  %v1157_v15 = vand.u32 2147483647, %v1141_v7  ;;  %v1086_v44 = vadd.f32 %v3479_v57, %v1085_v35  ;;  %1197 = vadd.xlane.f32.xlu0 %v1196_v38 }
 0x2d5   : > { %v1112_v53 = vadd.f32 %v2893_v16, %v1094_v31  ;;  %v1144_v45 = vadd.f32 1.0, %v1094_v31  ;;  %v1176_v46 = vmul.f32 0.6931472, %v2795_v36  ;;  %v1205_v58 = vsel %vm465_vm0, %v1170_v18, 0.0 }
 0x2d6   : > { %v1110_v17 = vadd.f32 %v2894_v34, %v1086_v44  ;;  %v1142_v48 = vadd.f32 1.0, %v1086_v44  ;;  %v2556_v55 = vpop.f32.mrf.mxu0  ;;  %2808 = vlog2.f32 %v1157_v15 }
 0x2d7   : > { %v2797_v54 = vpop.eup %2796  ;;  %1128 = vst.msk [vmem:[%s3486_s28 + $0x78] sm:$0xff] %vm465_vm0, %v1112_v53  ;;  %v1160_v50 = vand.u32 2147483647, %v1144_v45  ;;  %v3555_v60 = vadd.f32 %v2556_v55, %v3300_v49  ;;  %v1214_v20 = vsel %vm465_vm0, %v1176_v46, 0.0 }
 0x2d8   : > { %1126 = vst.msk [vmem:[%s3486_s28 + $0x68] sm:$0xff] %vm465_vm0, %v1110_v17  ;;  %v1158_v52 = vand.u32 2147483647, %v1142_v48  ;;  %v1716_v25 = vpop.f32.mrf.mxu0  ;;  %1212 = vadd.xlane.f32.xlu0 %v1211_v37  ;;  %1215 = vadd.xlane.f32.xlu1 %v1214_v20  ;;  %v1172_v27 = vmul.f32 0.6931472, %v2797_v54  ;;  %v2799_v59 = vpop.eup %2798 }
 0x2d9   : > { %2810 = vlog2.f32 %v1160_v50  ;;  %v1781_v39 = vmul.f32 0.5, %v3555_v60  ;;  %v3562_v0 = vadd.f32 %v3300_v49, %v1716_v25  ;;  %v1182_v13 = vmul.f32 0.6931472, %v2799_v59 }
 0x2da   : > { %2812 = vlog2.f32 %v1158_v52  ;;  %v2557_v21 = vpop.f32.mrf.mxu0  ;;  %v2801_v4 = vpop.eup %2800  ;;  %v1208_v40 = vsel %vm465_vm0, %v1172_v27, 0.0 }
 0x2db   : > { %2814 = vtanh.f32 %v1781_v39  ;;  %v1779_v23 = vmul.f32 0.5, %v3562_v0  ;;  %v3567_v22 = vadd.f32 %v2557_v21, %v3300_v49  ;;  %v1223_v28 = vsel %vm465_vm0, %v1182_v13, 0.0 }
 0x2dc   : > { %v1719_v1 = vpop.f32.mrf.mxu0  ;;  %1206 = vadd.xlane.f32.xlu0 %v1205_v58  ;;  %1209 = vadd.xlane.f32.xlu1 %v1208_v40  ;;  %v1178_v26 = vmul.f32 0.6931472, %v2801_v4 }
 0x2dd   : > { %2816 = vtanh.f32 %v1779_v23  ;;  %v1782_v33 = vmul.f32 0.5, %v3567_v22  ;;  %v3572_v42 = vadd.f32 %v3300_v49, %v1719_v1 }
 0x2de   : > { %v2803_v24 = vpop.eup %2802  ;;  %v2560_v11 = vpop.f32.mrf.mxu0  ;;  %v1217_v2 = vsel %vm465_vm0, %v1178_v26, 0.0 }
 0x2df   : > { %v2805_v62 = vpop.eup %2804  ;;  %2818 = vtanh.f32 %v1782_v33  ;;  %v1780_v61 = vmul.f32 0.5, %v3572_v42  ;;  %v3577_v30 = vadd.f32 %v2560_v11, %v3300_v49  ;;  %v1184_v10 = vmul.f32 0.6931472, %v2803_v24 }
 0x2e0   : > { %v1732_v47 = vpop.f32.mrf.mxu0  ;;  %1224 = vadd.xlane.f32.xlu0 %v1223_v28  ;;  %v1180_v63 = vmul.f32 0.6931472, %v2805_v62 }
 0x2e1   : > { %v2807_v5 = vpop.eup %2806  ;;  %2820 = vtanh.f32 %v1780_v61  ;;  %v1785_v8 = vmul.f32 0.5, %v3577_v30  ;;  %v3586_v56 = vadd.f32 %v3583_v43, %v1732_v47  ;;  %v1226_v12 = vsel %vm465_vm0, %v1184_v10, 0.0 }
 0x2e2   : > { %v2561_v49 = vpop.f32.mrf.mxu0  ;;  %1227 = vadd.xlane.f32.xlu1 %v1226_v12  ;;  %v1190_v14 = vmul.f32 0.6931472, %v2807_v5  ;;  %v1220_v29 = vsel %vm465_vm0, %v1180_v63, 0.0 }
 0x2e3   : > { %2822 = vtanh.f32 %v1785_v8  ;;  %v1783_v41 = vmul.f32 0.5, %v3586_v56  ;;  %v3591_v51 = vadd.f32 %v3583_v43, %v2561_v49  ;;  %v2809_v9 = vpop.eup %2808 }
 0x2e4   : > { %v1735_v3 = vpop.f32.mrf.mxu0  ;;  %1218 = vadd.xlane.f32.xlu0 %v1217_v2  ;;  %v1235_v6 = vsel %vm465_vm0, %v1190_v14, 0.0  ;;  %v1186_v15 = vmul.f32 0.6931472, %v2809_v9 }
 0x2e5   : > { %2824 = vtanh.f32 %v1783_v41  ;;  %v1786_v32 = vmul.f32 0.5, %v3591_v51  ;;  %v3596_v19 = vadd.f32 %v3583_v43, %v1735_v3 }
 0x2e6   : > { %v2811_v7 = vpop.eup %2810  ;;  %1221 = vadd.xlane.f32.xlu1 %v1220_v29  ;;  %v2564_v38 = vpop.f32.mrf.mxu0  ;;  %v1229_v50 = vsel %vm465_vm0, %v1186_v15, 0.0 }
 0x2e7   : > { %v2813_v31 = vpop.eup %2812  ;;  %2826 = vtanh.f32 %v1786_v32  ;;  %v1784_v35 = vmul.f32 0.5, %v3596_v19  ;;  %v1192_v36 = vmul.f32 0.6931472, %v2811_v7  ;;  %v3602_v16 = vadd.f32 %v3583_v43, %v2564_v38 }
 0x2e8   : > { %v2815_v44 = vpop.eup %2814  ;;  %1236 = vadd.xlane.f32.xlu0 %v1235_v6  ;;  %v1748_v45 = vpop.f32.mrf.mxu0  ;;  %v1188_v34 = vmul.f32 0.6931472, %v2813_v31 }
 0x2e9   : > { %v1813_v53 = vmul.f32 0.5, %v2815_v44  ;;  %2828 = vtanh.f32 %v1784_v35  ;;  %v1238_v46 = vsel %vm465_vm0, %v1192_v36, 0.0  ;;  %v1789_v48 = vmul.f32 0.5, %v3602_v16 }
 0x2ea   : > { %v2817_v17 = vpop.eup %2816  ;;  %v3607_v55 = vadd.f32 %v3583_v43, %v1748_v45  ;;  %1239 = vadd.xlane.f32.xlu1 %v1238_v46  ;;  %v2565_v54 = vpop.f32.mrf.mxu0  ;;  %v1232_v21 = vsel %vm465_vm0, %v1188_v34, 0.0 }
 0x2eb   : > { %v1829_v37 = vadd.f32 0.5, %v1813_v53  ;;  %v1811_v18 = vmul.f32 0.5, %v2817_v17  ;;  %2830 = vtanh.f32 %v1789_v48  ;;  %v3612_v25 = vadd.f32 %v3583_v43, %v2565_v54 }
 0x2ec   : > { %v2819_v20 = vpop.eup %2818  ;;  %v1787_v52 = vmul.f32 0.5, %v3607_v55  ;;  %1230 = vadd.xlane.f32.xlu0 %v1229_v50  ;;  %v1751_v39 = vpop.f32.mrf.mxu0 }
 0x2ed   : > { %v1827_v27 = vadd.f32 0.5, %v1811_v18  ;;  %v1814_v59 = vmul.f32 0.5, %v2819_v20  ;;  %v1790_v13 = vmul.f32 0.5, %v3612_v25  ;;  %v3617_v4 = vadd.f32 %v3583_v43, %v1751_v39 }
 0x2ee   : > { %v2821_v58 = vpop.eup %2820  ;;  %2832 = vtanh.f32 %v1787_v52  ;;  %1233 = vadd.xlane.f32.xlu1 %v1232_v21  ;;  %v1845_v23 = vmul.f32 %v1829_v37, %v3555_v60  ;;  %v2568_v33 = vpop.f32.mrf.mxu0 }
 0x2ef   : > { %v1830_v40 = vadd.f32 0.5, %v1814_v59  ;;  %v1812_v1 = vmul.f32 0.5, %v2821_v58  ;;  %2834 = vtanh.f32 %v1790_v13  ;;  %v1788_v11 = vmul.f32 0.5, %v3617_v4 }
 0x2f0   : > { %v2823_v24 = vpop.eup %2822  ;;  %v3622_v28 = vadd.f32 %v3583_v43, %v2568_v33  ;;  %v1843_v26 = vmul.f32 %v1827_v27, %v3562_v0  ;;  %v1764_v47 = vpop.f32.mrf.mxu0  ;;  %v1861_v8 = vmul.f32 0.90909094, %v1845_v23 }
 0x2f1   : > { %v1846_v62 = vmul.f32 %v1830_v40, %v3567_v22  ;;  %v1828_v61 = vadd.f32 0.5, %v1812_v1  ;;  %v1817_v10 = vmul.f32 0.5, %v2823_v24  ;;  %2836 = vtanh.f32 %v1788_v11 }
 0x2f2   : > { %v2825_v63 = vpop.eup %2824  ;;  %v1793_v60 = vmul.f32 0.5, %v3622_v28  ;;  %v3628_v5 = vadd.f32 %v3583_v43, %v1764_v47  ;;  %v2569_v14 = vpop.f32.mrf.mxu0  ;;  %v1859_v9 = vmul.f32 0.90909094, %v1843_v26 }
 0x2f3   : > { %v1844_v12 = vmul.f32 %v1828_v61, %v3572_v42  ;;  %v1815_v49 = vmul.f32 0.5, %v2825_v63  ;;  %v1862_v2 = vmul.f32 0.90909094, %v1846_v62  ;;  %v3633_v22 = vadd.f32 %v3583_v43, %v2569_v14 }
 0x2f4   : > { %v2827_v41 = vpop.eup %2826  ;;  %2838 = vtanh.f32 %v1793_v60  ;;  %v1791_v0 = vmul.f32 0.5, %v3628_v5  ;;  %v1833_v32 = vadd.f32 0.5, %v1817_v10  ;;  %v1767_v7 = vpop.f32.mrf.mxu0 }
 0x2f5   : > { %v1860_v3 = vmul.f32 0.90909094, %v1844_v12  ;;  %v1831_v29 = vadd.f32 0.5, %v1815_v49  ;;  %v1818_v31 = vmul.f32 0.5, %v2827_v41  ;;  %v1794_v42 = vmul.f32 0.5, %v3633_v22 }
 0x2f6   : > { %v2829_v6 = vpop.eup %2828  ;;  %2840 = vtanh.f32 %v1791_v0  ;;  %v1768_v35 = vadd.f32 %v3583_v43, %v1767_v7  ;;  %v1876_v15 = vpack.c.bf16 %v1862_v2, %v1861_v8  ;;  %v1849_v17 = vmul.f32 %v1833_v32, %v3577_v30 }
 0x2f7   : > { %v1875_v38 = vpack.c.bf16 %v1860_v3, %v1859_v9  ;;  %v1816_v36 = vmul.f32 0.5, %v2829_v6  ;;  %v1834_v44 = vadd.f32 0.5, %v1818_v31  ;;  %2842 = vtanh.f32 %v1794_v42 }
 0x2f8   : > { %v1792_v53 = vmul.f32 0.5, %v1768_v35  ;;  %v2831_v45 = vpop.eup %2830  ;;  %v1847_v46 = vmul.f32 %v1831_v29, %v3586_v56  ;;  %v1865_v56 = vmul.f32 0.90909094, %v1849_v17 }
 0x2f9   : > { %v1832_v34 = vadd.f32 0.5, %v1816_v36  ;;  %2574 = vmatprep.mubr.msk.bf16.mxu1 %vm465_vm0, %v1875_v38  ;;  %v1850_v48 = vmul.f32 %v1834_v44, %v3591_v51  ;;  %v1821_v18 = vmul.f32 0.5, %v2831_v45 }
 0x2fa   : > { %2844 = vtanh.f32 %v1792_v53  ;;  %2575 = vmatmul.mubr.msk.bf16.vlgmr.msra.gmra.mxu1 %vm465_vm0, %v1876_v15  ;;  %v1863_v52 = vmul.f32 0.90909094, %v1847_v46 }
 0x2fb   : > { %v2833_v43 = vpop.eup %2832  ;;  %v1848_v37 = vmul.f32 %v1832_v34, %v3596_v19  ;;  %v1866_v54 = vmul.f32 0.90909094, %v1850_v48  ;;  %v1837_v30 = vadd.f32 0.5, %v1821_v18 }
 0x2fc   : > { %v1819_v50 = vmul.f32 0.5, %v2833_v43  ;;  %v2835_v20 = vpop.eup %2834 }
 0x2fd   : > { %v1864_v27 = vmul.f32 0.90909094, %v1848_v37  ;;  %v1822_v39 = vmul.f32 0.5, %v2835_v20  ;;  %v1878_v13 = vpack.c.bf16 %v1866_v54, %v1865_v56  ;;  %v1853_v11 = vmul.f32 %v1837_v30, %v3602_v16 }
 0x2fe   : > { %v1835_v59 = vadd.f32 0.5, %v1819_v50  ;;  %v2837_v21 = vpop.eup %2836 }
 0x2ff   : > { %v1877_v58 = vpack.c.bf16 %v1864_v27, %v1863_v52  ;;  %v1838_v51 = vadd.f32 0.5, %v1822_v39  ;;  %v1820_v23 = vmul.f32 0.5, %v2837_v21  ;;  %v1869_v49 = vmul.f32 0.90909094, %v1853_v11  ;;  %v2896_v52 = vld [vmem:[%s2988_s15 + $0x90] sm:$0xff] }
 0x300   : > { %v1851_v19 = vmul.f32 %v1835_v59, %v3607_v55 }
 0x301   : > { %v2839_v40 = vpop.eup %2838  ;;  %2578 = vmatprep.mubr.msk.bf16.mxu1 %vm465_vm0, %v1877_v58  ;;  %v1854_v1 = vmul.f32 %v1838_v51, %v3612_v25  ;;  %v1836_v33 = vadd.f32 0.5, %v1820_v23  ;;  %v2897_v58 = vld [vmem:[%s2988_s15 + $0x80] sm:$0xff] }
 0x302   : > { %2579 = vmatmul.mubr.msk.bf16.gmra.mxu1 %vm465_vm0, %v1878_v13  ;;  %v1825_v26 = vmul.f32 0.5, %v2839_v40  ;;  %v1867_v63 = vmul.f32 0.90909094, %v1851_v19  ;;  %v2898_v19 = vld [vmem:[%s2988_s15 + $0x98] sm:$0xff] }
 0x303   : > { %v2841_v24 = vpop.eup %2840  ;;  %v1852_v62 = vmul.f32 %v1836_v33, %v3617_v4  ;;  %v1870_v47 = vmul.f32 0.90909094, %v1854_v1 }
 0x304   : > { %v1823_v61 = vmul.f32 0.5, %v2841_v24  ;;  %v2843_v10 = vpop.eup %2842  ;;  %v1841_v55 = vadd.f32 0.5, %v1825_v26 }
 0x305   : > { %v1868_v60 = vmul.f32 0.90909094, %v1852_v62  ;;  %v1826_v14 = vmul.f32 0.5, %v2843_v10  ;;  %v1880_v2 = vpack.c.bf16 %v1870_v47, %v1869_v49 }
 0x306   : > { %v1839_v8 = vadd.f32 0.5, %v1823_v61  ;;  %v1857_v4 = vmul.f32 %v1841_v55, %v3622_v28  ;;  %v2899_v61 = vld [vmem:[%s2988_s15 + $0x88] sm:$0xff] }
 0x307   : > { %v2845_v12 = vpop.eup %2844  ;;  %v1879_v25 = vpack.c.bf16 %v1868_v60, %v1867_v63  ;;  %v1842_v0 = vadd.f32 0.5, %v1826_v14  ;;  %v2900_v60 = vld [vmem:[%s2988_s15 + $0xb0] sm:$0xff] }
 0x308   : > { %v1824_v41 = vmul.f32 0.5, %v2845_v12  ;;  %v1855_v16 = vmul.f32 %v1839_v8, %v3628_v5  ;;  %v1873_v31 = vmul.f32 0.90909094, %v1857_v4 }
 0x309   : > { %2582 = vmatprep.mubr.msk.bf16.mxu1 %vm465_vm0, %v1879_v25  ;;  %v1858_v3 = vmul.f32 %v1842_v0, %v3633_v22 }
 0x30a   : > { %v1840_v9 = vadd.f32 0.5, %v1824_v41  ;;  %2583 = vmatmul.mubr.msk.bf16.gmra.mxu1 %vm465_vm0, %v1880_v2  ;;  %v1871_v7 = vmul.f32 0.90909094, %v1855_v16  ;;  %v2901_v41 = vld [vmem:[%s2988_s15 + $0xa0] sm:$0xff] }
 0x30b   : > { %v1874_v29 = vmul.f32 0.90909094, %v1858_v3  ;;  %v2902_v3 = vld [vmem:[%s2988_s15 + $0xb8] sm:$0xff] }
 0x30c   : > { %v1856_v32 = vmul.f32 %v1840_v9, %v1768_v35 }
 0x30d   : > { %v1882_v38 = vpack.c.bf16 %v1874_v29, %v1873_v31 }
 0x30e   : > { %v1872_v6 = vmul.f32 0.90909094, %v1856_v32 }
 0x310   : > { %v1881_v42 = vpack.c.bf16 %v1872_v6, %v1871_v7 }
 0x312   : > { %2586 = vmatprep.mubr.msk.bf16.mxu1 %vm465_vm0, %v1881_v42  ;;  %v2903_v42 = vld [vmem:[%s2988_s15 + $0xa8] sm:$0xff] }
 0x313   : > { %2587 = vmatmul.mubr.msk.bf16.gmra.mxu1 %vm465_vm0, %v1882_v38 }
 0x355   : > { %v1201_v28 = vpop.xlane.xlu1 %1200 }
 0x356   : > { %1244 = vst.msk [vmem:[%s3660_s11 + $0x10] sm:$0xff] %vm1241_vm1, %v1201_v28 }
 0x357   : > { %v1195_v5 = vpop.xlane.xlu0 %1194 }
 0x358   : > { %1242 = vst.msk [vmem:[%s3660_s11] sm:$0xff] %vm1241_vm1, %v1195_v5 }
 0x359   : > { %v1204_v22 = vpop.xlane.xlu1 %1203 }
 0x35a   : > { %1245 = vst.msk [vmem:[%s3660_s11 + $0x18] sm:$0xff] %vm1241_vm1, %v1204_v22 }
 0x35d   : > { %v1198_v35 = vpop.xlane.xlu0 %1197 }
 0x35e   : > { %1243 = vst.msk [vmem:[%s3660_s11 + $0x8] sm:$0xff] %vm1241_vm1, %v1198_v35 }
 0x361   : > { %v1213_v36 = vpop.xlane.xlu0 %1212  ;;  %v1216_v15 = vpop.xlane.xlu1 %1215 }
 0x362   : > { %1248 = vst.msk [vmem:[%s3660_s11 + $0x30] sm:$0xff] %vm1241_vm1, %v1213_v36  ;;  %1249 = vst.msk [vmem:[%s3660_s11 + $0x38] sm:$0xff] %vm1241_vm1, %v1216_v15  ;;  %v2904_v15 = vld [vmem:[%s2988_s15 + $0xd0] sm:$0xff] }
 0x365   : > { %v1207_v44 = vpop.xlane.xlu0 %1206  ;;  %v1210_v53 = vpop.xlane.xlu1 %1209 }
 0x366   : > { %1246 = vst.msk [vmem:[%s3660_s11 + $0x20] sm:$0xff] %vm1241_vm1, %v1207_v44  ;;  %1247 = vst.msk [vmem:[%s3660_s11 + $0x28] sm:$0xff] %vm1241_vm1, %v1210_v53 }
 0x369   : > { %v1225_v45 = vpop.xlane.xlu0 %1224 }
 0x36a   : > { %1252 = vst.msk [vmem:[%s3660_s11 + $0x50] sm:$0xff] %vm1241_vm1, %v1225_v45 }
 0x36b   : > { %v1228_v46 = vpop.xlane.xlu1 %1227 }
 0x36c   : > { %1253 = vst.msk [vmem:[%s3660_s11 + $0x58] sm:$0xff] %vm1241_vm1, %v1228_v46 }
 0x36d   : > { %v1219_v34 = vpop.xlane.xlu0 %1218 }
 0x36e   : > { %1250 = vst.msk [vmem:[%s3660_s11 + $0x40] sm:$0xff] %vm1241_vm1, %v1219_v34 }
 0x36f   : > { %v1222_v17 = vpop.xlane.xlu1 %1221 }
 0x370   : > { %1251 = vst.msk [vmem:[%s3660_s11 + $0x48] sm:$0xff] %vm1241_vm1, %v1222_v17 }
 0x371   : > { %v1237_v48 = vpop.xlane.xlu0 %1236 }
 0x372   : > { %1256 = vst.msk [vmem:[%s3660_s11 + $0x70] sm:$0xff] %vm1241_vm1, %v1237_v48 }
 0x373   : > { %v1240_v43 = vpop.xlane.xlu1 %1239 }
 0x374   : > { %1257 = vst.msk [vmem:[%s3660_s11 + $0x78] sm:$0xff] %vm1241_vm1, %v1240_v43  ;;  %v2905_v43 = vld [vmem:[%s2988_s15 + $0xc0] sm:$0xff] }
 0x375   : > { %v1231_v37 = vpop.xlane.xlu0 %1230 }
 0x376   : > { %1254 = vst.msk [vmem:[%s3660_s11 + $0x60] sm:$0xff] %vm1241_vm1, %v1231_v37 }
 0x377   : > { %v1234_v18 = vpop.xlane.xlu1 %1233 }
 0x378   : > { %1255 = vst.msk [vmem:[%s3660_s11 + $0x68] sm:$0xff] %vm1241_vm1, %v1234_v18 }
 0x3ba   : > { %v2576_v54 = vpop.f32.mrf.mxu1 }
 0x3bb   : > { %v1977_v50 = vadd.f32 %v2576_v54, %v3479_v57 }
 0x3bc   : > { %v1968_v20 = vpop.f32.mrf.mxu1 }
 0x3bd   : > { %v2033_v27 = vadd.f32 %v2896_v52, %v1977_v50  ;;  %v2066_v56 = vadd.f32 1.0, %v1977_v50  ;;  %v1969_v59 = vadd.f32 %v3479_v57, %v1968_v20 }
 0x3be   : > { %v2577_v39 = vpop.f32.mrf.mxu1 }
 0x3bf   : > { %2378 = vst.msk [vmem:[%s3486_s28 + $0x90] sm:$0xff] %vm465_vm0, %v2033_v27  ;;  %v2082_v21 = vand.u32 2147483647, %v2066_v56  ;;  %v2031_v30 = vadd.f32 %v2897_v58, %v1969_v59  ;;  %v2064_v13 = vadd.f32 1.0, %v1969_v59  ;;  %v1980_v51 = vadd.f32 %v2577_v39, %v3479_v57  ;;  %v2906_v39 = vld [vmem:[%s2988_s15 + $0xd8] sm:$0xff] }
 0x3c0   : > { %v1971_v23 = vpop.f32.mrf.mxu1 }
 0x3c1   : > { %2846 = vlog2.f32 %v2082_v21  ;;  %2376 = vst.msk [vmem:[%s3486_s28 + $0x80] sm:$0xff] %vm465_vm0, %v2031_v30  ;;  %v2080_v40 = vand.u32 2147483647, %v2064_v13  ;;  %v2034_v1 = vadd.f32 %v2898_v19, %v1980_v51  ;;  %v2067_v33 = vadd.f32 1.0, %v1980_v51  ;;  %v2907_v51 = vld [vmem:[%s2988_s15 + $0xc8] sm:$0xff] }
 0x3c2   : > { %v1972_v24 = vadd.f32 %v3479_v57, %v1971_v23  ;;  %v2580_v11 = vpop.f32.mrf.mxu1 }
 0x3c3   : > { %2848 = vlog2.f32 %v2080_v40  ;;  %2379 = vst.msk [vmem:[%s3486_s28 + $0x98] sm:$0xff] %vm465_vm0, %v2034_v1  ;;  %v2083_v26 = vand.u32 2147483647, %v2067_v33  ;;  %v1993_v62 = vadd.f32 %v2580_v11, %v3479_v57 }
 0x3c4   : > { %v2032_v10 = vadd.f32 %v2899_v61, %v1972_v24  ;;  %v2065_v47 = vadd.f32 1.0, %v1972_v24  ;;  %v1984_v63 = vpop.f32.mrf.mxu1 }
 0x3c5   : > { %2850 = vlog2.f32 %v2083_v26  ;;  %v2037_v8 = vadd.f32 %v2900_v60, %v1993_v62  ;;  %v2070_v12 = vadd.f32 1.0, %v1993_v62  ;;  %v1985_v49 = vadd.f32 %v3479_v57, %v1984_v63 }
 0x3c6   : > { %2377 = vst.msk [vmem:[%s3486_s28 + $0x88] sm:$0xff] %vm465_vm0, %v2032_v10  ;;  %v2081_v55 = vand.u32 2147483647, %v2065_v47  ;;  %v2581_v14 = vpop.f32.mrf.mxu1  ;;  %v2908_v10 = vld [vmem:[%s2988_s15 + $0xf0] sm:$0xff] }
 0x3c7   : > { %2382 = vst.msk [vmem:[%s3486_s28 + $0xb0] sm:$0xff] %vm465_vm0, %v2037_v8  ;;  %v2086_v25 = vand.u32 2147483647, %v2070_v12  ;;  %v2035_v2 = vadd.f32 %v2901_v41, %v1985_v49  ;;  %v2068_v0 = vadd.f32 1.0, %v1985_v49  ;;  %v1996_v16 = vadd.f32 %v2581_v14, %v3479_v57 }
 0x3c8   : > { %2852 = vlog2.f32 %v2081_v55  ;;  %v1987_v9 = vpop.f32.mrf.mxu1 }
 0x3c9   : > { %2854 = vlog2.f32 %v2086_v25  ;;  %2380 = vst.msk [vmem:[%s3486_s28 + $0xa0] sm:$0xff] %vm465_vm0, %v2035_v2  ;;  %v2084_v4 = vand.u32 2147483647, %v2068_v0  ;;  %v2038_v32 = vadd.f32 %v2902_v3, %v1996_v16  ;;  %v2071_v29 = vadd.f32 1.0, %v1996_v16  ;;  %v2909_v25 = vld [vmem:[%s2988_s15 + $0xe0] sm:$0xff] }
 0x3ca   : > { %v1988_v7 = vadd.f32 %v3479_v57, %v1987_v9  ;;  %v2584_v31 = vpop.f32.mrf.mxu1 }
 0x3cb   : > { %2856 = vlog2.f32 %v2084_v4  ;;  %2383 = vst.msk [vmem:[%s3486_s28 + $0xb8] sm:$0xff] %vm465_vm0, %v2038_v32  ;;  %v2087_v6 = vand.u32 2147483647, %v2071_v29  ;;  %v2009_v5 = vadd.f32 %v2584_v31, %v3479_v57 }
 0x3cc   : > { %v2036_v38 = vadd.f32 %v2903_v42, %v1988_v7  ;;  %v2069_v28 = vadd.f32 1.0, %v1988_v7  ;;  %v2000_v22 = vpop.f32.mrf.mxu1 }
 0x3cd   : > { %2858 = vlog2.f32 %v2087_v6  ;;  %v2041_v44 = vadd.f32 %v2904_v15, %v2009_v5  ;;  %v2074_v53 = vadd.f32 1.0, %v2009_v5  ;;  %v2001_v45 = vadd.f32 %v3479_v57, %v2000_v22  ;;  %v2910_v6 = vld [vmem:[%s2988_s15 + $0xf8] sm:$0xff] }
 0x3ce   : > { %v2847_v35 = vpop.eup %2846  ;;  %2381 = vst.msk [vmem:[%s3486_s28 + $0xa8] sm:$0xff] %vm465_vm0, %v2036_v38  ;;  %v2085_v36 = vand.u32 2147483647, %v2069_v28  ;;  %v2585_v46 = vpop.f32.mrf.mxu1  ;;  %v2911_v28 = vld [vmem:[%s2988_s15 + $0xe8] sm:$0xff] }
 0x3cf   : > { %v2101_v34 = vmul.f32 0.6931472, %v2847_v35  ;;  %2386 = vst.msk [vmem:[%s3486_s28 + $0xd0] sm:$0xff] %vm465_vm0, %v2041_v44  ;;  %v2090_v48 = vand.u32 2147483647, %v2074_v53  ;;  %v2039_v37 = vadd.f32 %v2905_v43, %v2001_v45  ;;  %v2072_v18 = vadd.f32 1.0, %v2001_v45 }
 0x3d0   : > { %v2849_v17 = vpop.eup %2848  ;;  %2860 = vlog2.f32 %v2085_v36  ;;  %v2012_v54 = vadd.f32 %v2585_v46, %v3479_v57  ;;  %v2003_v50 = vpop.f32.mrf.mxu1 }
 0x3d1   : > { %v2134_v20 = vsel %vm465_vm0, %v2101_v34, 0.0  ;;  %v2097_v52 = vmul.f32 0.6931472, %v2849_v17  ;;  %2862 = vlog2.f32 %v2090_v48  ;;  %2384 = vst.msk [vmem:[%s3486_s28 + $0xc0] sm:$0xff] %vm465_vm0, %v2039_v37  ;;  %v2088_v56 = vand.u32 2147483647, %v2072_v18 }
 0x3d2   : > { %v2851_v27 = vpop.eup %2850  ;;  %v2004_v59 = vadd.f32 %v3479_v57, %v2003_v50  ;;  %2135 = vadd.xlane.f32.xlu0 %v2134_v20  ;;  %v2042_v21 = vadd.f32 %v2906_v39, %v2012_v54  ;;  %v2075_v58 = vadd.f32 1.0, %v2012_v54 }
 0x3d3   : > { %v2588_v30 = vpop.f32.mrf.mxu1  ;;  %v2103_v13 = vmul.f32 0.6931472, %v2851_v27  ;;  %2864 = vlog2.f32 %v2088_v56  ;;  %v2128_v26 = vsel %vm465_vm0, %v2097_v52, 0.0 }
 0x3d4   : > { %v2040_v23 = vadd.f32 %v2907_v51, %v2004_v59  ;;  %v2073_v40 = vadd.f32 1.0, %v2004_v59  ;;  %v2025_v19 = vadd.f32 %v2588_v30, %v3479_v57  ;;  %2387 = vst.msk [vmem:[%s3486_s28 + $0xd8] sm:$0xff] %vm465_vm0, %v2042_v21  ;;  %v2091_v33 = vand.u32 2147483647, %v2075_v58 }
 0x3d5   : > { %v2853_v1 = vpop.eup %2852  ;;  %v2016_v24 = vpop.f32.mrf.mxu1  ;;  %v2137_v11 = vsel %vm465_vm0, %v2103_v13, 0.0 }
 0x3d6   : > { %v2855_v62 = vpop.eup %2854  ;;  %2385 = vst.msk [vmem:[%s3486_s28 + $0xc8] sm:$0xff] %vm465_vm0, %v2040_v23  ;;  %v2089_v61 = vand.u32 2147483647, %v2073_v40  ;;  %v2045_v47 = vadd.f32 %v2908_v10, %v2025_v19  ;;  %v2078_v63 = vadd.f32 1.0, %v2025_v19  ;;  %v2017_v60 = vadd.f32 %v3479_v57, %v2016_v24  ;;  %2138 = vadd.xlane.f32.xlu1 %v2137_v11  ;;  %2129 = vadd.xlane.f32.xlu0 %v2128_v26 }
 0x3d7   : > { %2866 = vlog2.f32 %v2091_v33  ;;  %v2589_v8 = vpop.f32.mrf.mxu1  ;;  %v2099_v12 = vmul.f32 0.6931472, %v2853_v1  ;;  %v2109_v49 = vmul.f32 0.6931472, %v2855_v62 }
 0x3d8   : > { %v2857_v55 = vpop.eup %2856  ;;  %2868 = vlog2.f32 %v2089_v61  ;;  %2390 = vst.msk [vmem:[%s3486_s28 + $0xf0] sm:$0xff] %vm465_vm0, %v2045_v47  ;;  %v2094_v14 = vand.u32 2147483647, %v2078_v63  ;;  %v2043_v41 = vadd.f32 %v2909_v25, %v2017_v60  ;;  %v2076_v2 = vadd.f32 1.0, %v2017_v60 }
 0x3d9   : > { %v2028_v0 = vadd.f32 %v2589_v8, %v3479_v57  ;;  %v2019_v16 = vpop.f32.mrf.mxu1  ;;  %v2131_v9 = vsel %vm465_vm0, %v2099_v12, 0.0  ;;  %v2146_v4 = vsel %vm465_vm0, %v2109_v49, 0.0  ;;  %v2105_v3 = vmul.f32 0.6931472, %v2857_v55 }
 0x3da   : > { %v2859_v32 = vpop.eup %2858  ;;  %2388 = vst.msk [vmem:[%s3486_s28 + $0xe0] sm:$0xff] %vm465_vm0, %v2043_v41  ;;  %v2092_v29 = vand.u32 2147483647, %v2076_v2  ;;  %v2020_v7 = vadd.f32 %v3479_v57, %v2019_v16  ;;  %2132 = vadd.xlane.f32.xlu1 %v2131_v9  ;;  %2147 = vadd.xlane.f32.xlu0 %v2146_v4  ;;  %2870 = vlog2.f32 %v2094_v14 }
 0x3db   : > { %v2046_v31 = vadd.f32 %v2910_v6, %v2028_v0  ;;  %v2079_v42 = vadd.f32 1.0, %v2028_v0  ;;  %v2111_v38 = vmul.f32 0.6931472, %v2859_v32  ;;  %v2140_v57 = vsel %vm465_vm0, %v2105_v3, 0.0 }
 0x3dc   : > { %2872 = vlog2.f32 %v2092_v29  ;;  %v2044_v5 = vadd.f32 %v2911_v28, %v2020_v7  ;;  %v2077_v22 = vadd.f32 1.0, %v2020_v7 }
 0x3dd   : > { %v2861_v35 = vpop.eup %2860  ;;  %2391 = vst.msk [vmem:[%s3486_s28 + $0xf8] sm:$0xff] %vm465_vm0, %v2046_v31  ;;  %v2095_v36 = vand.u32 2147483647, %v2079_v42  ;;  %v2149_v15 = vsel %vm465_vm0, %v2111_v38, 0.0 }
 0x3de   : > { %2389 = vst.msk [vmem:[%s3486_s28 + $0xe8] sm:$0xff] %vm465_vm0, %v2044_v5  ;;  %v2093_v44 = vand.u32 2147483647, %v2077_v22  ;;  %2150 = vadd.xlane.f32.xlu1 %v2149_v15  ;;  %2141 = vadd.xlane.f32.xlu0 %v2140_v57  ;;  %v2107_v53 = vmul.f32 0.6931472, %v2861_v35  ;;  %v2863_v45 = vpop.eup %2862 }
 0x3df   : > { %2874 = vlog2.f32 %v2095_v36  ;;  %v2117_v46 = vmul.f32 0.6931472, %v2863_v45 }
 0x3e0   : > { %2876 = vlog2.f32 %v2093_v44  ;;  %v2865_v34 = vpop.eup %2864  ;;  %v2143_v17 = vsel %vm465_vm0, %v2107_v53, 0.0 }
 0x3e1   : > { %v2158_v48 = vsel %vm465_vm0, %v2117_v46, 0.0  ;;  %v2113_v43 = vmul.f32 0.6931472, %v2865_v34 }
 0x3e2   : > { %2144 = vadd.xlane.f32.xlu1 %v2143_v17  ;;  %2159 = vadd.xlane.f32.xlu0 %v2158_v48 }
 0x3e3   : > { %v2152_v50 = vsel %vm465_vm0, %v2113_v43, 0.0 }
 0x3e4   : > { %v2867_v37 = vpop.eup %2866 }
 0x3e5   : > { %v2869_v18 = vpop.eup %2868  ;;  %v2119_v54 = vmul.f32 0.6931472, %v2867_v37 }
 0x3e6   : > { %2153 = vadd.xlane.f32.xlu0 %v2152_v50  ;;  %v2115_v52 = vmul.f32 0.6931472, %v2869_v18 }
 0x3e7   : > { %v2161_v20 = vsel %vm465_vm0, %v2119_v54, 0.0  ;;  %v2871_v27 = vpop.eup %2870 }
 0x3e8   : > { %2162 = vadd.xlane.f32.xlu1 %v2161_v20  ;;  %v2155_v39 = vsel %vm465_vm0, %v2115_v52, 0.0  ;;  %v2125_v30 = vmul.f32 0.6931472, %v2871_v27 }
 0x3e9   : > { %v2873_v56 = vpop.eup %2872 }
 0x3ea   : > { %v2121_v59 = vmul.f32 0.6931472, %v2873_v56  ;;  %v2170_v40 = vsel %vm465_vm0, %v2125_v30, 0.0 }
 0x3ec   : > { %v2875_v21 = vpop.eup %2874  ;;  %2156 = vadd.xlane.f32.xlu1 %v2155_v39  ;;  %v2164_v58 = vsel %vm465_vm0, %v2121_v59, 0.0 }
 0x3ed   : > { %v2877_v13 = vpop.eup %2876  ;;  %2165 = vadd.xlane.f32.xlu0 %v2164_v58  ;;  %v2127_v19 = vmul.f32 0.6931472, %v2875_v21 }
 0x3ee   : > { %v2123_v51 = vmul.f32 0.6931472, %v2877_v13 }
 0x3ef   : > { %v2173_v1 = vsel %vm465_vm0, %v2127_v19, 0.0 }
 0x3f0   : > { %v2167_v23 = vsel %vm465_vm0, %v2123_v51, 0.0 }
 0x3f1   : > { %2168 = vadd.xlane.f32.xlu1 %v2167_v23  ;;  %2171 = vadd.xlane.f32.xlu0 %v2170_v40 }
 0x3f5   : > { %2174 = vadd.xlane.f32.xlu1 %v2173_v1 }
 0x45b   : > { %v2136_v33 = vpop.xlane.xlu0 %2135 }
 0x45c   : > { %2394 = vst.msk [vmem:[%s3660_s11 + $0x90] sm:$0xff] %vm1241_vm1, %v2136_v33 }
 0x45f   : > { %v2139_v24 = vpop.xlane.xlu1 %2138  ;;  %v2130_v11 = vpop.xlane.xlu0 %2129 }
 0x460   : > { %2395 = vst.msk [vmem:[%s3660_s11 + $0x98] sm:$0xff] %vm1241_vm1, %v2139_v24  ;;  %2392 = vst.msk [vmem:[%s3660_s11 + $0x80] sm:$0xff] %vm1241_vm1, %v2130_v11 }
 0x463   : > { %v2133_v26 = vpop.xlane.xlu1 %2132  ;;  %v2148_v62 = vpop.xlane.xlu0 %2147 }
 0x464   : > { %2393 = vst.msk [vmem:[%s3660_s11 + $0x88] sm:$0xff] %vm1241_vm1, %v2133_v26  ;;  %2398 = vst.msk [vmem:[%s3660_s11 + $0xb0] sm:$0xff] %vm1241_vm1, %v2148_v62 }
 0x467   : > { %v2151_v61 = vpop.xlane.xlu1 %2150  ;;  %v2142_v10 = vpop.xlane.xlu0 %2141 }
 0x468   : > { %2399 = vst.msk [vmem:[%s3660_s11 + $0xb8] sm:$0xff] %vm1241_vm1, %v2151_v61  ;;  %2396 = vst.msk [vmem:[%s3660_s11 + $0xa0] sm:$0xff] %vm1241_vm1, %v2142_v10 }
 0x46b   : > { %v2145_v47 = vpop.xlane.xlu1 %2144  ;;  %v2160_v63 = vpop.xlane.xlu0 %2159 }
 0x46c   : > { %2397 = vst.msk [vmem:[%s3660_s11 + $0xa8] sm:$0xff] %vm1241_vm1, %v2145_v47  ;;  %2402 = vst.msk [vmem:[%s3660_s11 + $0xd0] sm:$0xff] %vm1241_vm1, %v2160_v63 }
 0x46f   : > { %v2154_v60 = vpop.xlane.xlu0 %2153 }
 0x470   : > { %2400 = vst.msk [vmem:[%s3660_s11 + $0xc0] sm:$0xff] %vm1241_vm1, %v2154_v60 }
 0x471   : > { %v2163_v8 = vpop.xlane.xlu1 %2162 }
 0x472   : > { %2403 = vst.msk [vmem:[%s3660_s11 + $0xd8] sm:$0xff] %vm1241_vm1, %v2163_v8 }
 0x475   : > { %v2157_v12 = vpop.xlane.xlu1 %2156 }
 0x476   : > { %2401 = vst.msk [vmem:[%s3660_s11 + $0xc8] sm:$0xff] %vm1241_vm1, %v2157_v12  ;;  %v2166_v49 = vpop.xlane.xlu0 %2165 }
 0x477   : > { %2404 = vst.msk [vmem:[%s3660_s11 + $0xe0] sm:$0xff] %vm1241_vm1, %v2166_v49 }
 0x47a   : > { %v2169_v55 = vpop.xlane.xlu1 %2168  ;;  %v2172_v14 = vpop.xlane.xlu0 %2171 }
 0x47b   : > { %2405 = vst.msk [vmem:[%s3660_s11 + $0xe8] sm:$0xff] %vm1241_vm1, %v2169_v55  ;;  %2406 = vst.msk [vmem:[%s3660_s11 + $0xf0] sm:$0xff] %vm1241_vm1, %v2172_v14 }
 0x47e   : > { %v2175_v25 = vpop.xlane.xlu1 %2174 }
 0x47f   : > { %2407 = vst.msk [vmem:[%s3660_s11 + $0xf8] sm:$0xff] %vm1241_vm1, %v2175_v25 }
 0x480 PF: > { %s19_s27 = sadd.s32 1, %s2918_s27  }
 0x481   : > { %p16_p4 = scmp.ge.s32.totalorder %s19_s27, 4  }
 0x483   :  { %18 = sbr.rel (!%p16_p4) target bundleno = 1 (0x1), region = 93 }

</bundles_post_ra>
